<compile_context>
chip_gen: v5e
topology: v5e:2x2
jax: 0.10.0
libtpu: 0.0.40
codegen_flags: <defaults>
</compile_context>

<pallas_src>
import functools

import jax
import jax.numpy as jnp
from jax.experimental import pallas as pl
from jax.experimental.pallas import tpu as pltpu


def _warp_kernel(base_ref, lo_ref, hi_ref, grid_ref, flow_ref, src_ref, out_ref,
                 acc_ref, idx_ref, wgt_ref, *, dims, n_out_tiles):
    D, H, W = dims
    tn = grid_ref.shape[1]
    tk = src_ref.shape[2]
    b = pl.program_id(0)
    t = pl.program_id(1)
    k = pl.program_id(2)          # innermost (reduction) axis: step within the source band
    bt = b * n_out_tiles + t      # flat (batch, out-tile) index into the prefetched tables

    # ---- k == 0: zero the accumulator and hoist the k-invariant sampling math --------
    @pl.when(k == 0)
    def _():
        acc_ref[...] = jnp.zeros_like(acc_ref)
        loc = grid_ref[...] + flow_ref[0].astype(jnp.float32)        # (3, tn)
        zc, yc, xc = loc[0:1, :], loc[1:2, :], loc[2:3, :]
        z0 = jnp.floor(zc)
        y0 = jnp.floor(yc)
        x0 = jnp.floor(xc)
        tz, ty, tx = zc - z0, yc - y0, xc - x0
        z0i = z0.astype(jnp.int32)
        y0i = y0.astype(jnp.int32)
        x0i = x0.astype(jnp.int32)
        idx_rows, wgt_rows = [], []
        for cz in (0, 1):
            zi = z0i + cz
            wz = tz if cz else 1.0 - tz
            vz = (zi >= 0) & (zi < D)
            for cy in (0, 1):
                yi = y0i + cy
                wy = ty if cy else 1.0 - ty
                vy = (yi >= 0) & (yi < H)
                for cx in (0, 1):
                    xi = x0i + cx
                    wx = tx if cx else 1.0 - tx
                    vx = (xi >= 0) & (xi < W)
                    idx_rows.append(zi * (H * W) + yi * W + xi)       # (1, tn) flat index
                    wgt_rows.append(jnp.where(vz & vy & vx, wz * wy * wx, 0.0))
        idx_ref[...] = jnp.concatenate(idx_rows, axis=0)              # (8, tn) int32
        wgt_ref[...] = jnp.concatenate(wgt_rows, axis=0)              # (8, tn) f32

    # Global source-tile index this step actually loaded (chosen by the src index_map).
    s = base_ref[bt] + k

    # ---- skip guard: only in-band source tiles contribute ----------------------------
    @pl.when((s >= lo_ref[bt]) & (s <= hi_ref[bt]))
    def _():
        row = jax.lax.broadcasted_iota(jnp.int32, (tk, tn), 0)        # local source row
        off = s * tk

        def onehot(c):
            return jnp.where(row == (idx_ref[c:c + 1, :] - off), wgt_ref[c:c + 1, :], 0.0)

        a = onehot(0)
        for c in range(1, 8):                                         # SSA accumulation
            a = a + onehot(c)
        # MXU: acc[C, tn] += src[C, tk] @ A[tk, tn]   (f32 accumulation).
        acc_ref[...] += jnp.dot(src_ref[0].astype(jnp.float32), a,
                                preferred_element_type=jnp.float32)

    @pl.when(k == pl.num_programs(2) - 1)
    def _():
        out_ref[0] = acc_ref[...].astype(out_ref.dtype)


def _round_up(x, m):
    return (x + m - 1) // m * m


def register_model_forward(img, flow, *, tn=512, tk=256, num_k_steps=None,
                           vmem_limit_bytes=32 * 1024 * 1024):
    """Pallas equivalent of register_model().forward((img, flow)) (bilinear mode)."""
    N, C, D, H, W = img.shape
    assert flow.shape == (N, 3, D, H, W)
    M = D * H * W

    # Lane tiles must be multiples of 128 and need not exceed the padded extent.
    tn = max(128, min(_round_up(tn, 128), _round_up(M, 128)))
    tk = max(128, min(_round_up(tk, 128), _round_up(M, 128)))
    m_out = _round_up(M, tn)
    # v7x has two TensorCores: make sure the parallel (b, t) axes expose >= 2 units.
    if N == 1:
        while (m_out // tn) < 2 and tn > 128:
            tn -= 128
            m_out = _round_up(M, tn)
    m_src = _round_up(M, tk)
    n_out_tiles = m_out // tn
    n_src_tiles = m_src // tk

    # Identity sampling grid (the module's registered 'grid' buffer), flattened + padded.
    # Padded output voxels get d >= D so every corner weight is 0 there.
    n_idx = jnp.arange(m_out, dtype=jnp.int32)
    grid = jnp.stack(
        [n_idx // (H * W), (n_idx // W) % H, n_idx % W]
    ).astype(jnp.float32)                                             # (3, m_out)

    src = img.reshape(N, C, M)
    if m_src > M:
        src = jnp.pad(src, ((0, 0), (0, 0), (0, m_src - M)))
    fl = flow.reshape(N, 3, M).astype(jnp.float32)
    if m_out > M:
        fl = jnp.pad(fl, ((0, 0), (0, 0), (0, m_out - M)))

    # ---- per-(batch, output-tile) source band (scalar-prefetch metadata) -------------
    # All valid trilinear corners of voxel n lie in [lo_idx(n), hi_idx(n)] (flat index is
    # monotone in the clipped per-dim corner coordinates); padded columns are masked out.
    loc = grid[None] + fl                                             # (N, 3, m_out)
    f0 = jnp.floor(loc).astype(jnp.int32)
    z0, y0, x0 = f0[:, 0], f0[:, 1], f0[:, 2]
    lo_idx = (jnp.clip(z0, 0, D - 1) * (H * W)
              + jnp.clip(y0, 0, H - 1) * W
              + jnp.clip(x0, 0, W - 1))
    hi_idx = (jnp.clip(z0 + 1, 0, D - 1) * (H * W)
              + jnp.clip(y0 + 1, 0, H - 1) * W
              + jnp.clip(x0 + 1, 0, W - 1))
    col_valid = (n_idx < M)[None]
    lo_idx = jnp.where(col_valid, lo_idx, M - 1)
    hi_idx = jnp.where(col_valid, hi_idx, 0)
    band_lo = lo_idx.reshape(N, n_out_tiles, tn).min(axis=-1)         # (N, T) flat index
    band_hi = hi_idx.reshape(N, n_out_tiles, tn).max(axis=-1)
    lo_tile = (band_lo // tk).astype(jnp.int32)                       # (N, T) tile index
    hi_tile = (band_hi // tk).astype(jnp.int32)

    # Reduction-axis length = max band length (in tiles).  Computed concretely when the
    # wrapper runs eagerly; under jit it falls back to the full (always-correct) axis and
    # the in-kernel guard still skips the non-overlapping steps.
    if num_k_steps is None:
        try:
            num_k = int(jnp.max(hi_tile - lo_tile)) + 1
        except (jax.errors.ConcretizationTypeError, TypeError):
            num_k = n_src_tiles
    else:
        num_k = int(num_k_steps)
    num_k = max(1, min(num_k, n_src_tiles))

    # Per-tile starting source tile, clamped so base + num_k - 1 stays in range.
    base = jnp.clip(lo_tile, 0, n_src_tiles - num_k).astype(jnp.int32).reshape(-1)
    lo_tile = lo_tile.reshape(-1)
    hi_tile = hi_tile.reshape(-1)

    kernel = functools.partial(_warp_kernel, dims=(D, H, W), n_out_tiles=n_out_tiles)
    out = pl.pallas_call(
        kernel,
        out_shape=jax.ShapeDtypeStruct((N, C, m_out), img.dtype),
        grid_spec=pltpu.PrefetchScalarGridSpec(
            num_scalar_prefetch=3,                                    # base, lo_tile, hi_tile
            grid=(N, n_out_tiles, num_k),                             # band axis innermost
            in_specs=[
                pl.BlockSpec((3, tn), lambda b, t, k, base, lo, hi: (0, t)),
                pl.BlockSpec((1, 3, tn), lambda b, t, k, base, lo, hi: (b, 0, t)),
                pl.BlockSpec(
                    (1, C, tk),
                    lambda b, t, k, base, lo, hi: (b, 0, base[b * n_out_tiles + t] + k)),
            ],
            out_specs=pl.BlockSpec((1, C, tn), lambda b, t, k, base, lo, hi: (b, 0, t)),
            scratch_shapes=[
                pltpu.VMEM((C, tn), jnp.float32),    # output accumulator
                pltpu.VMEM((8, tn), jnp.int32),      # per-corner source flat index
                pltpu.VMEM((8, tn), jnp.float32),    # per-corner trilinear weight
            ],
        ),
        compiler_params=pltpu.CompilerParams(
            dimension_semantics=("parallel", "parallel", "arbitrary"),
            vmem_limit_bytes=vmem_limit_bytes,
        ),
    )(base, lo_tile, hi_tile, grid, fl, src)
    return out[:, :, :M].reshape(N, C, D, H, W)


def _reference(img, flow):
    """Pure-JAX reference of the same semantics (direct gather) for sanity checking."""
    N, C, D, H, W = img.shape
    dz, dy, dx = jnp.meshgrid(
        jnp.arange(D, dtype=jnp.float32),
        jnp.arange(H, dtype=jnp.float32),
        jnp.arange(W, dtype=jnp.float32),
        indexing="ij",
    )
    grid = jnp.stack([dz, dy, dx])[None]
    loc = grid + flow
    zc, yc, xc = loc[:, 0], loc[:, 1], loc[:, 2]
    z0, y0, x0 = jnp.floor(zc), jnp.floor(yc), jnp.floor(xc)
    tz, ty, tx = zc - z0, yc - y0, xc - x0
    src_flat = img.reshape(N, C, D * H * W)
    out = jnp.zeros_like(img)
    for cz in (0, 1):
        for cy in (0, 1):
            for cx in (0, 1):
                zi = z0.astype(jnp.int32) + cz
                yi = y0.astype(jnp.int32) + cy
                xi = x0.astype(jnp.int32) + cx
                w = (
                    (tz if cz else 1.0 - tz)
                    * (ty if cy else 1.0 - ty)
                    * (tx if cx else 1.0 - tx)
                )
                valid = (zi >= 0) & (zi < D) & (yi >= 0) & (yi < H) & (xi >= 0) & (xi < W)
                idx = (
                    jnp.clip(zi, 0, D - 1) * (H * W)
                    + jnp.clip(yi, 0, H - 1) * W
                    + jnp.clip(xi, 0, W - 1)
                )
                vals = jnp.take_along_axis(src_flat, idx.reshape(N, 1, -1), axis=2)
                vals = vals.reshape(N, C, D, H, W)
                out = out + jnp.where(valid, w, 0.0)[:, None] * vals
    return out


if __name__ == "__main__":
    key = jax.random.PRNGKey(0)
    k_img, k_f1, k_f2 = jax.random.split(key, 3)

    # Small analogue of img_size=(64, 256, 256): (D, H, W) = (6, 10, 16), batch=2, C=3.
    # M = 960 exercises output/source padding, multi-tile outputs, a multi-step banded
    # reduction, the in-kernel overlap skip and the clamped per-tile source base.
    N, C, D, H, W = 2, 3, 6, 10, 16
    img = jax.random.normal(k_img, (N, C, D, H, W), dtype=jnp.float32)
    flow_wide = 1.2 * jax.random.normal(k_f1, (N, 3, D, H, W), dtype=jnp.float32)
    flow_narrow = 0.4 * jax.random.normal(k_f2, (N, 3, D, H, W), dtype=jnp.float32)

    out1 = register_model_forward(img, flow_wide, tn=128, tk=128)
    out1 = jax.block_until_ready(out1)
    ref1 = _reference(img, flow_wide)
    assert out1.shape == (N, C, D, H, W)
    if not jnp.allclose(out1, ref1, atol=1e-4, rtol=1e-4):
        raise AssertionError("Pallas grid_sample kernel (small tiles) does not match reference")

    out2 = register_model_forward(img, flow_narrow)   # default tn=512, tk=256 path
    out2 = jax.block_until_ready(out2)
    ref2 = _reference(img, flow_narrow)
    if not jnp.allclose(out2, ref2, atol=1e-4, rtol=1e-4):
        raise AssertionError("Pallas grid_sample kernel (default tiles) does not match reference")

    print("KERNEL_OK")
</pallas_src>

<mosaic_0001>
module attributes {stable_mosaic.version = 11 : i64} {
  func.func @_warp_kernel(%arg0: i32, %arg1: i32, %arg2: i32, %arg3: memref<16xi32, #tpu.memory_space<smem>>, %arg4: memref<16xi32, #tpu.memory_space<smem>>, %arg5: memref<16xi32, #tpu.memory_space<smem>>, %arg6: memref<3x128xf32, #tpu.memory_space<vmem>>, %arg7: memref<1x3x128xf32, #tpu.memory_space<vmem>>, %arg8: memref<1x3x128xf32, #tpu.memory_space<vmem>>, %arg9: memref<1x3x128xf32, #tpu.memory_space<vmem>>, %arg10: memref<3x128xf32, #tpu.memory_space<vmem>>, %arg11: memref<8x128xi32, #tpu.memory_space<vmem>>, %arg12: memref<8x128xf32, #tpu.memory_space<vmem>>) attributes {dimension_semantics = [#tpu.dimension_semantics<parallel>, #tpu.dimension_semantics<parallel>, #tpu.dimension_semantics<arbitrary>], iteration_bounds = array<i64: 2, 8, 8>, scalar_prefetch = 3 : i64, scratch_operands = 3 : i64, tpu.core_type = #tpu.core_type<tc>, window_params = [{transform_indices = @transform_0, window_bounds = array<i64: 3, 128>}, {transform_indices = @transform_1, window_bounds = array<i64: 1, 3, 128>}, {transform_indices = @transform_2, window_bounds = array<i64: 1, 3, 128>}, {transform_indices = @transform_3, window_bounds = array<i64: 1, 3, 128>}]} {
    %c8_i32 = arith.constant 8 : i32
    %0 = arith.muli %arg0, %c8_i32 : i32
    %1 = arith.addi %0, %arg1 : i32
    %c0_i32 = arith.constant 0 : i32
    %2 = arith.cmpi eq, %arg2, %c0_i32 : i32
    %3 = arith.extui %2 : i1 to i32
    %c0_i32_0 = arith.constant 0 : i32
    %4 = arith.cmpi ne, %3, %c0_i32_0 : i32
    scf.if %4 {
      %cst = arith.constant 0.000000e+00 : f32
      %20 = vector.broadcast %cst : f32 to vector<3x128xf32>
      %c0 = arith.constant 0 : index
      %c0_3 = arith.constant 0 : index
      %21 = vector.load %arg10[%c0, %c0_3] : memref<3x128xf32, #tpu.memory_space<vmem>>, vector<3x128xf32>
      tpu.vector_store %arg10[%c0, %c0_3], %20 {strides = array<i32>} : memref<3x128xf32, #tpu.memory_space<vmem>>, vector<3x128xf32>,
      %c0_4 = arith.constant 0 : index
      %c0_5 = arith.constant 0 : index
      %22 = vector.load %arg6[%c0_4, %c0_5] : memref<3x128xf32, #tpu.memory_space<vmem>>, vector<3x128xf32>
      %c0_6 = arith.constant 0 : index
      %c0_7 = arith.constant 0 : index
      %c0_8 = arith.constant 0 : index
      %23 = vector.load %arg7[%c0_6, %c0_7, %c0_8] : memref<1x3x128xf32, #tpu.memory_space<vmem>>, vector<1x3x128xf32>
      %24 = vector.shape_cast %23 : vector<1x3x128xf32> to vector<3x128xf32>
      %25 = arith.addf %22, %24 : vector<3x128xf32>
      %26 = vector.extract_strided_slice %25 {offsets = [0, 0], sizes = [1, 128], strides = [1, 1]} : vector<3x128xf32> to vector<1x128xf32>
      %27 = vector.extract_strided_slice %25 {offsets = [1, 0], sizes = [1, 128], strides = [1, 1]} : vector<3x128xf32> to vector<1x128xf32>
      %28 = vector.extract_strided_slice %25 {offsets = [2, 0], sizes = [1, 128], strides = [1, 1]} : vector<3x128xf32> to vector<1x128xf32>
      %29 = math.floor %26 : vector<1x128xf32>
      %30 = math.floor %27 : vector<1x128xf32>
      %31 = math.floor %28 : vector<1x128xf32>
      %32 = arith.subf %26, %29 : vector<1x128xf32>
      %33 = arith.subf %27, %30 : vector<1x128xf32>
      %34 = arith.subf %28, %31 : vector<1x128xf32>
      %35 = arith.fptosi %29 : vector<1x128xf32> to vector<1x128xi32>
      %36 = arith.fptosi %30 : vector<1x128xf32> to vector<1x128xi32>
      %37 = arith.fptosi %31 : vector<1x128xf32> to vector<1x128xi32>
      %c0_i32_9 = arith.constant 0 : i32
      %38 = vector.broadcast %c0_i32_9 : i32 to vector<1x128xi32>
      %39 = arith.addi %35, %38 : vector<1x128xi32>
      %cst_10 = arith.constant 1.000000e+00 : f32
      %40 = vector.broadcast %cst_10 : f32 to vector<1x128xf32>
      %41 = arith.subf %40, %32 : vector<1x128xf32>
      %c0_i32_11 = arith.constant 0 : i32
      %42 = vector.broadcast %c0_i32_11 : i32 to vector<1x128xi32>
      %43 = arith.cmpi sge, %39, %42 : vector<1x128xi32>
      %c6_i32 = arith.constant 6 : i32
      %44 = vector.broadcast %c6_i32 : i32 to vector<1x128xi32>
      %45 = arith.cmpi slt, %39, %44 : vector<1x128xi32>
      %46 = arith.andi %43, %45 : vector<1x128xi1>
      %c0_i32_12 = arith.constant 0 : i32
      %47 = vector.broadcast %c0_i32_12 : i32 to vector<1x128xi32>
      %48 = arith.addi %36, %47 : vector<1x128xi32>
      %cst_13 = arith.constant 1.000000e+00 : f32
      %49 = vector.broadcast %cst_13 : f32 to vector<1x128xf32>
      %50 = arith.subf %49, %33 : vector<1x128xf32>
      %c0_i32_14 = arith.constant 0 : i32
      %51 = vector.broadcast %c0_i32_14 : i32 to vector<1x128xi32>
      %52 = arith.cmpi sge, %48, %51 : vector<1x128xi32>
      %c10_i32 = arith.constant 10 : i32
      %53 = vector.broadcast %c10_i32 : i32 to vector<1x128xi32>
      %54 = arith.cmpi slt, %48, %53 : vector<1x128xi32>
      %55 = arith.andi %52, %54 : vector<1x128xi1>
      %c0_i32_15 = arith.constant 0 : i32
      %56 = vector.broadcast %c0_i32_15 : i32 to vector<1x128xi32>
      %57 = arith.addi %37, %56 : vector<1x128xi32>
      %cst_16 = arith.constant 1.000000e+00 : f32
      %58 = vector.broadcast %cst_16 : f32 to vector<1x128xf32>
      %59 = arith.subf %58, %34 : vector<1x128xf32>
      %c0_i32_17 = arith.constant 0 : i32
      %60 = vector.broadcast %c0_i32_17 : i32 to vector<1x128xi32>
      %61 = arith.cmpi sge, %57, %60 : vector<1x128xi32>
      %c16_i32 = arith.constant 16 : i32
      %62 = vector.broadcast %c16_i32 : i32 to vector<1x128xi32>
      %63 = arith.cmpi slt, %57, %62 : vector<1x128xi32>
      %64 = arith.andi %61, %63 : vector<1x128xi1>
      %c160_i32 = arith.constant 160 : i32
      %65 = vector.broadcast %c160_i32 : i32 to vector<1x128xi32>
      %66 = arith.muli %39, %65 : vector<1x128xi32>
      %c16_i32_18 = arith.constant 16 : i32
      %67 = vector.broadcast %c16_i32_18 : i32 to vector<1x128xi32>
      %68 = arith.muli %48, %67 : vector<1x128xi32>
      %69 = arith.addi %66, %68 : vector<1x128xi32>
      %70 = arith.addi %69, %57 : vector<1x128xi32>
      %71 = arith.andi %46, %55 : vector<1x128xi1>
      %72 = arith.andi %71, %64 : vector<1x128xi1>
      %73 = arith.mulf %41, %50 : vector<1x128xf32>
      %74 = arith.mulf %73, %59 : vector<1x128xf32>
      %cst_19 = arith.constant 0.000000e+00 : f32
      %75 = vector.broadcast %cst_19 : f32 to vector<1x128xf32>
      %76 = arith.select %72, %74, %75 : vector<1x128xi1>, vector<1x128xf32>
      %c1_i32 = arith.constant 1 : i32
      %77 = vector.broadcast %c1_i32 : i32 to vector<1x128xi32>
      %78 = arith.addi %37, %77 : vector<1x128xi32>
      %c0_i32_20 = arith.constant 0 : i32
      %79 = vector.broadcast %c0_i32_20 : i32 to vector<1x128xi32>
      %80 = arith.cmpi sge, %78, %79 : vector<1x128xi32>
      %c16_i32_21 = arith.constant 16 : i32
      %81 = vector.broadcast %c16_i32_21 : i32 to vector<1x128xi32>
      %82 = arith.cmpi slt, %78, %81 : vector<1x128xi32>
      %83 = arith.andi %80, %82 : vector<1x128xi1>
      %c160_i32_22 = arith.constant 160 : i32
      %84 = vector.broadcast %c160_i32_22 : i32 to vector<1x128xi32>
      %85 = arith.muli %39, %84 : vector<1x128xi32>
      %c16_i32_23 = arith.constant 16 : i32
      %86 = vector.broadcast %c16_i32_23 : i32 to vector<1x128xi32>
      %87 = arith.muli %48, %86 : vector<1x128xi32>
      %88 = arith.addi %85, %87 : vector<1x128xi32>
      %89 = arith.addi %88, %78 : vector<1x128xi32>
      %90 = arith.andi %46, %55 : vector<1x128xi1>
      %91 = arith.andi %90, %83 : vector<1x128xi1>
      %92 = arith.mulf %41, %50 : vector<1x128xf32>
      %93 = arith.mulf %92, %34 : vector<1x128xf32>
      %cst_24 = arith.constant 0.000000e+00 : f32
      %94 = vector.broadcast %cst_24 : f32 to vector<1x128xf32>
      %95 = arith.select %91, %93, %94 : vector<1x128xi1>, vector<1x128xf32>
      %c1_i32_25 = arith.constant 1 : i32
      %96 = vector.broadcast %c1_i32_25 : i32 to vector<1x128xi32>
      %97 = arith.addi %36, %96 : vector<1x128xi32>
      %c0_i32_26 = arith.constant 0 : i32
      %98 = vector.broadcast %c0_i32_26 : i32 to vector<1x128xi32>
      %99 = arith.cmpi sge, %97, %98 : vector<1x128xi32>
      %c10_i32_27 = arith.constant 10 : i32
      %100 = vector.broadcast %c10_i32_27 : i32 to vector<1x128xi32>
      %101 = arith.cmpi slt, %97, %100 : vector<1x128xi32>
      %102 = arith.andi %99, %101 : vector<1x128xi1>
      %c0_i32_28 = arith.constant 0 : i32
      %103 = vector.broadcast %c0_i32_28 : i32 to vector<1x128xi32>
      %104 = arith.addi %37, %103 : vector<1x128xi32>
      %cst_29 = arith.constant 1.000000e+00 : f32
      %105 = vector.broadcast %cst_29 : f32 to vector<1x128xf32>
      %106 = arith.subf %105, %34 : vector<1x128xf32>
      %c0_i32_30 = arith.constant 0 : i32
      %107 = vector.broadcast %c0_i32_30 : i32 to vector<1x128xi32>
      %108 = arith.cmpi sge, %104, %107 : vector<1x128xi32>
      %c16_i32_31 = arith.constant 16 : i32
      %109 = vector.broadcast %c16_i32_31 : i32 to vector<1x128xi32>
      %110 = arith.cmpi slt, %104, %109 : vector<1x128xi32>
      %111 = arith.andi %108, %110 : vector<1x128xi1>
      %c160_i32_32 = arith.constant 160 : i32
      %112 = vector.broadcast %c160_i32_32 : i32 to vector<1x128xi32>
      %113 = arith.muli %39, %112 : vector<1x128xi32>
      %c16_i32_33 = arith.constant 16 : i32
      %114 = vector.broadcast %c16_i32_33 : i32 to vector<1x128xi32>
      %115 = arith.muli %97, %114 : vector<1x128xi32>
      %116 = arith.addi %113, %115 : vector<1x128xi32>
      %117 = arith.addi %116, %104 : vector<1x128xi32>
      %118 = arith.andi %46, %102 : vector<1x128xi1>
      %119 = arith.andi %118, %111 : vector<1x128xi1>
      %120 = arith.mulf %41, %33 : vector<1x128xf32>
      %121 = arith.mulf %120, %106 : vector<1x128xf32>
      %cst_34 = arith.constant 0.000000e+00 : f32
      %122 = vector.broadcast %cst_34 : f32 to vector<1x128xf32>
      %123 = arith.select %119, %121, %122 : vector<1x128xi1>, vector<1x128xf32>
      %c1_i32_35 = arith.constant 1 : i32
      %124 = vector.broadcast %c1_i32_35 : i32 to vector<1x128xi32>
      %125 = arith.addi %37, %124 : vector<1x128xi32>
      %c0_i32_36 = arith.constant 0 : i32
      %126 = vector.broadcast %c0_i32_36 : i32 to vector<1x128xi32>
      %127 = arith.cmpi sge, %125, %126 : vector<1x128xi32>
      %c16_i32_37 = arith.constant 16 : i32
      %128 = vector.broadcast %c16_i32_37 : i32 to vector<1x128xi32>
      %129 = arith.cmpi slt, %125, %128 : vector<1x128xi32>
      %130 = arith.andi %127, %129 : vector<1x128xi1>
      %c160_i32_38 = arith.constant 160 : i32
      %131 = vector.broadcast %c160_i32_38 : i32 to vector<1x128xi32>
      %132 = arith.muli %39, %131 : vector<1x128xi32>
      %c16_i32_39 = arith.constant 16 : i32
      %133 = vector.broadcast %c16_i32_39 : i32 to vector<1x128xi32>
      %134 = arith.muli %97, %133 : vector<1x128xi32>
      %135 = arith.addi %132, %134 : vector<1x128xi32>
      %136 = arith.addi %135, %125 : vector<1x128xi32>
      %137 = arith.andi %46, %102 : vector<1x128xi1>
      %138 = arith.andi %137, %130 : vector<1x128xi1>
      %139 = arith.mulf %41, %33 : vector<1x128xf32>
      %140 = arith.mulf %139, %34 : vector<1x128xf32>
      %cst_40 = arith.constant 0.000000e+00 : f32
      %141 = vector.broadcast %cst_40 : f32 to vector<1x128xf32>
      %142 = arith.select %138, %140, %141 : vector<1x128xi1>, vector<1x128xf32>
      %c1_i32_41 = arith.constant 1 : i32
      %143 = vector.broadcast %c1_i32_41 : i32 to vector<1x128xi32>
      %144 = arith.addi %35, %143 : vector<1x128xi32>
      %c0_i32_42 = arith.constant 0 : i32
      %145 = vector.broadcast %c0_i32_42 : i32 to vector<1x128xi32>
      %146 = arith.cmpi sge, %144, %145 : vector<1x128xi32>
      %c6_i32_43 = arith.constant 6 : i32
      %147 = vector.broadcast %c6_i32_43 : i32 to vector<1x128xi32>
      %148 = arith.cmpi slt, %144, %147 : vector<1x128xi32>
      %149 = arith.andi %146, %148 : vector<1x128xi1>
      %c0_i32_44 = arith.constant 0 : i32
      %150 = vector.broadcast %c0_i32_44 : i32 to vector<1x128xi32>
      %151 = arith.addi %36, %150 : vector<1x128xi32>
      %cst_45 = arith.constant 1.000000e+00 : f32
      %152 = vector.broadcast %cst_45 : f32 to vector<1x128xf32>
      %153 = arith.subf %152, %33 : vector<1x128xf32>
      %c0_i32_46 = arith.constant 0 : i32
      %154 = vector.broadcast %c0_i32_46 : i32 to vector<1x128xi32>
      %155 = arith.cmpi sge, %151, %154 : vector<1x128xi32>
      %c10_i32_47 = arith.constant 10 : i32
      %156 = vector.broadcast %c10_i32_47 : i32 to vector<1x128xi32>
      %157 = arith.cmpi slt, %151, %156 : vector<1x128xi32>
      %158 = arith.andi %155, %157 : vector<1x128xi1>
      %c0_i32_48 = arith.constant 0 : i32
      %159 = vector.broadcast %c0_i32_48 : i32 to vector<1x128xi32>
      %160 = arith.addi %37, %159 : vector<1x128xi32>
      %cst_49 = arith.constant 1.000000e+00 : f32
      %161 = vector.broadcast %cst_49 : f32 to vector<1x128xf32>
      %162 = arith.subf %161, %34 : vector<1x128xf32>
      %c0_i32_50 = arith.constant 0 : i32
      %163 = vector.broadcast %c0_i32_50 : i32 to vector<1x128xi32>
      %164 = arith.cmpi sge, %160, %163 : vector<1x128xi32>
      %c16_i32_51 = arith.constant 16 : i32
      %165 = vector.broadcast %c16_i32_51 : i32 to vector<1x128xi32>
      %166 = arith.cmpi slt, %160, %165 : vector<1x128xi32>
      %167 = arith.andi %164, %166 : vector<1x128xi1>
      %c160_i32_52 = arith.constant 160 : i32
      %168 = vector.broadcast %c160_i32_52 : i32 to vector<1x128xi32>
      %169 = arith.muli %144, %168 : vector<1x128xi32>
      %c16_i32_53 = arith.constant 16 : i32
      %170 = vector.broadcast %c16_i32_53 : i32 to vector<1x128xi32>
      %171 = arith.muli %151, %170 : vector<1x128xi32>
      %172 = arith.addi %169, %171 : vector<1x128xi32>
      %173 = arith.addi %172, %160 : vector<1x128xi32>
      %174 = arith.andi %149, %158 : vector<1x128xi1>
      %175 = arith.andi %174, %167 : vector<1x128xi1>
      %176 = arith.mulf %32, %153 : vector<1x128xf32>
      %177 = arith.mulf %176, %162 : vector<1x128xf32>
      %cst_54 = arith.constant 0.000000e+00 : f32
      %178 = vector.broadcast %cst_54 : f32 to vector<1x128xf32>
      %179 = arith.select %175, %177, %178 : vector<1x128xi1>, vector<1x128xf32>
      %c1_i32_55 = arith.constant 1 : i32
      %180 = vector.broadcast %c1_i32_55 : i32 to vector<1x128xi32>
      %181 = arith.addi %37, %180 : vector<1x128xi32>
      %c0_i32_56 = arith.constant 0 : i32
      %182 = vector.broadcast %c0_i32_56 : i32 to vector<1x128xi32>
      %183 = arith.cmpi sge, %181, %182 : vector<1x128xi32>
      %c16_i32_57 = arith.constant 16 : i32
      %184 = vector.broadcast %c16_i32_57 : i32 to vector<1x128xi32>
      %185 = arith.cmpi slt, %181, %184 : vector<1x128xi32>
      %186 = arith.andi %183, %185 : vector<1x128xi1>
      %c160_i32_58 = arith.constant 160 : i32
      %187 = vector.broadcast %c160_i32_58 : i32 to vector<1x128xi32>
      %188 = arith.muli %144, %187 : vector<1x128xi32>
      %c16_i32_59 = arith.constant 16 : i32
      %189 = vector.broadcast %c16_i32_59 : i32 to vector<1x128xi32>
      %190 = arith.muli %151, %189 : vector<1x128xi32>
      %191 = arith.addi %188, %190 : vector<1x128xi32>
      %192 = arith.addi %191, %181 : vector<1x128xi32>
      %193 = arith.andi %149, %158 : vector<1x128xi1>
      %194 = arith.andi %193, %186 : vector<1x128xi1>
      %195 = arith.mulf %32, %153 : vector<1x128xf32>
      %196 = arith.mulf %195, %34 : vector<1x128xf32>
      %cst_60 = arith.constant 0.000000e+00 : f32
      %197 = vector.broadcast %cst_60 : f32 to vector<1x128xf32>
      %198 = arith.select %194, %196, %197 : vector<1x128xi1>, vector<1x128xf32>
      %c1_i32_61 = arith.constant 1 : i32
      %199 = vector.broadcast %c1_i32_61 : i32 to vector<1x128xi32>
      %200 = arith.addi %36, %199 : vector<1x128xi32>
      %c0_i32_62 = arith.constant 0 : i32
      %201 = vector.broadcast %c0_i32_62 : i32 to vector<1x128xi32>
      %202 = arith.cmpi sge, %200, %201 : vector<1x128xi32>
      %c10_i32_63 = arith.constant 10 : i32
      %203 = vector.broadcast %c10_i32_63 : i32 to vector<1x128xi32>
      %204 = arith.cmpi slt, %200, %203 : vector<1x128xi32>
      %205 = arith.andi %202, %204 : vector<1x128xi1>
      %c0_i32_64 = arith.constant 0 : i32
      %206 = vector.broadcast %c0_i32_64 : i32 to vector<1x128xi32>
      %207 = arith.addi %37, %206 : vector<1x128xi32>
      %cst_65 = arith.constant 1.000000e+00 : f32
      %208 = vector.broadcast %cst_65 : f32 to vector<1x128xf32>
      %209 = arith.subf %208, %34 : vector<1x128xf32>
      %c0_i32_66 = arith.constant 0 : i32
      %210 = vector.broadcast %c0_i32_66 : i32 to vector<1x128xi32>
      %211 = arith.cmpi sge, %207, %210 : vector<1x128xi32>
      %c16_i32_67 = arith.constant 16 : i32
      %212 = vector.broadcast %c16_i32_67 : i32 to vector<1x128xi32>
      %213 = arith.cmpi slt, %207, %212 : vector<1x128xi32>
      %214 = arith.andi %211, %213 : vector<1x128xi1>
      %c160_i32_68 = arith.constant 160 : i32
      %215 = vector.broadcast %c160_i32_68 : i32 to vector<1x128xi32>
      %216 = arith.muli %144, %215 : vector<1x128xi32>
      %c16_i32_69 = arith.constant 16 : i32
      %217 = vector.broadcast %c16_i32_69 : i32 to vector<1x128xi32>
      %218 = arith.muli %200, %217 : vector<1x128xi32>
      %219 = arith.addi %216, %218 : vector<1x128xi32>
      %220 = arith.addi %219, %207 : vector<1x128xi32>
      %221 = arith.andi %149, %205 : vector<1x128xi1>
      %222 = arith.andi %221, %214 : vector<1x128xi1>
      %223 = arith.mulf %32, %33 : vector<1x128xf32>
      %224 = arith.mulf %223, %209 : vector<1x128xf32>
      %cst_70 = arith.constant 0.000000e+00 : f32
      %225 = vector.broadcast %cst_70 : f32 to vector<1x128xf32>
      %226 = arith.select %222, %224, %225 : vector<1x128xi1>, vector<1x128xf32>
      %c1_i32_71 = arith.constant 1 : i32
      %227 = vector.broadcast %c1_i32_71 : i32 to vector<1x128xi32>
      %228 = arith.addi %37, %227 : vector<1x128xi32>
      %c0_i32_72 = arith.constant 0 : i32
      %229 = vector.broadcast %c0_i32_72 : i32 to vector<1x128xi32>
      %230 = arith.cmpi sge, %228, %229 : vector<1x128xi32>
      %c16_i32_73 = arith.constant 16 : i32
      %231 = vector.broadcast %c16_i32_73 : i32 to vector<1x128xi32>
      %232 = arith.cmpi slt, %228, %231 : vector<1x128xi32>
      %233 = arith.andi %230, %232 : vector<1x128xi1>
      %c160_i32_74 = arith.constant 160 : i32
      %234 = vector.broadcast %c160_i32_74 : i32 to vector<1x128xi32>
      %235 = arith.muli %144, %234 : vector<1x128xi32>
      %c16_i32_75 = arith.constant 16 : i32
      %236 = vector.broadcast %c16_i32_75 : i32 to vector<1x128xi32>
      %237 = arith.muli %200, %236 : vector<1x128xi32>
      %238 = arith.addi %235, %237 : vector<1x128xi32>
      %239 = arith.addi %238, %228 : vector<1x128xi32>
      %240 = arith.andi %149, %205 : vector<1x128xi1>
      %241 = arith.andi %240, %233 : vector<1x128xi1>
      %242 = arith.mulf %32, %33 : vector<1x128xf32>
      %243 = arith.mulf %242, %34 : vector<1x128xf32>
      %cst_76 = arith.constant 0.000000e+00 : f32
      %244 = vector.broadcast %cst_76 : f32 to vector<1x128xf32>
      %245 = arith.select %241, %243, %244 : vector<1x128xi1>, vector<1x128xf32>
      %246 = tpu.concatenate %70, %89, %117, %136, %173, %192, %220, %239 in 0 : vector<1x128xi32>, vector<1x128xi32>, vector<1x128xi32>, vector<1x128xi32>, vector<1x128xi32>, vector<1x128xi32>, vector<1x128xi32>, vector<1x128xi32> -> vector<8x128xi32>
      %c0_77 = arith.constant 0 : index
      %c0_78 = arith.constant 0 : index
      %247 = vector.load %arg11[%c0_77, %c0_78] : memref<8x128xi32, #tpu.memory_space<vmem>>, vector<8x128xi32>
      tpu.vector_store %arg11[%c0_77, %c0_78], %246 {strides = array<i32>} : memref<8x128xi32, #tpu.memory_space<vmem>>, vector<8x128xi32>,
      %248 = tpu.concatenate %76, %95, %123, %142, %179, %198, %226, %245 in 0 : vector<1x128xf32>, vector<1x128xf32>, vector<1x128xf32>, vector<1x128xf32>, vector<1x128xf32>, vector<1x128xf32>, vector<1x128xf32>, vector<1x128xf32> -> vector<8x128xf32>
      %c0_79 = arith.constant 0 : index
      %c0_80 = arith.constant 0 : index
      %249 = vector.load %arg12[%c0_79, %c0_80] : memref<8x128xf32, #tpu.memory_space<vmem>>, vector<8x128xf32>
      tpu.vector_store %arg12[%c0_79, %c0_80], %248 {strides = array<i32>} : memref<8x128xf32, #tpu.memory_space<vmem>>, vector<8x128xf32>,
    } else {
    }
    %5 = arith.index_cast %1 : i32 to index
    %6 = memref.load %arg3[%5] : memref<16xi32, #tpu.memory_space<smem>>
    %7 = arith.addi %6, %arg2 : i32
    %8 = arith.index_cast %1 : i32 to index
    %9 = memref.load %arg4[%8] : memref<16xi32, #tpu.memory_space<smem>>
    %10 = arith.cmpi sge, %7, %9 : i32
    %11 = arith.index_cast %1 : i32 to index
    %12 = memref.load %arg5[%11] : memref<16xi32, #tpu.memory_space<smem>>
    %13 = arith.cmpi sle, %7, %12 : i32
    %14 = arith.andi %10, %13 : i1
    %15 = arith.extui %14 : i1 to i32
    %c0_i32_1 = arith.constant 0 : i32
    %16 = arith.cmpi ne, %15, %c0_i32_1 : i32
    scf.if %16 {
      %20 = tpu.iota {dimensions = array<i32: 0>} : vector<128x128xi32>
      %c128_i32 = arith.constant 128 : i32
      %21 = arith.muli %7, %c128_i32 : i32
      %c0 = arith.constant 0 : index
      %c0_3 = arith.constant 0 : index
      %22 = vector.load %arg11[%c0, %c0_3] : memref<8x128xi32, #tpu.memory_space<vmem>>, vector<1x128xi32>
      %23 = vector.broadcast %21 : i32 to vector<1x128xi32>
      %24 = arith.subi %22, %23 : vector<1x128xi32>
      %25 = vector.broadcast %24 : vector<1x128xi32> to vector<128x128xi32>
      %26 = arith.cmpi eq, %20, %25 : vector<128x128xi32>
      %c0_4 = arith.constant 0 : index
      %c0_5 = arith.constant 0 : index
      %27 = vector.load %arg12[%c0_4, %c0_5] : memref<8x128xf32, #tpu.memory_space<vmem>>, vector<1x128xf32>
      %cst = arith.constant 0.000000e+00 : f32
      %28 = vector.shape_cast %27 : vector<1x128xf32> to vector<1x128xf32>
      %29 = vector.broadcast %28 : vector<1x128xf32> to vector<128x128xf32>
      %30 = vector.broadcast %cst : f32 to vector<128x128xf32>
      %31 = arith.select %26, %29, %30 : vector<128x128xi1>, vector<128x128xf32>
      %c1 = arith.constant 1 : index
      %c0_6 = arith.constant 0 : index
      %32 = vector.load %arg11[%c1, %c0_6] : memref<8x128xi32, #tpu.memory_space<vmem>>, vector<1x128xi32>
      %33 = vector.broadcast %21 : i32 to vector<1x128xi32>
      %34 = arith.subi %32, %33 : vector<1x128xi32>
      %35 = vector.broadcast %34 : vector<1x128xi32> to vector<128x128xi32>
      %36 = arith.cmpi eq, %20, %35 : vector<128x128xi32>
      %c1_7 = arith.constant 1 : index
      %c0_8 = arith.constant 0 : index
      %37 = vector.load %arg12[%c1_7, %c0_8] : memref<8x128xf32, #tpu.memory_space<vmem>>, vector<1x128xf32>
      %cst_9 = arith.constant 0.000000e+00 : f32
      %38 = vector.shape_cast %37 : vector<1x128xf32> to vector<1x128xf32>
      %39 = vector.broadcast %38 : vector<1x128xf32> to vector<128x128xf32>
      %40 = vector.broadcast %cst_9 : f32 to vector<128x128xf32>
      %41 = arith.select %36, %39, %40 : vector<128x128xi1>, vector<128x128xf32>
      %42 = arith.addf %31, %41 : vector<128x128xf32>
      %c2 = arith.constant 2 : index
      %c0_10 = arith.constant 0 : index
      %43 = vector.load %arg11[%c2, %c0_10] : memref<8x128xi32, #tpu.memory_space<vmem>>, vector<1x128xi32>
      %44 = vector.broadcast %21 : i32 to vector<1x128xi32>
      %45 = arith.subi %43, %44 : vector<1x128xi32>
      %46 = vector.broadcast %45 : vector<1x128xi32> to vector<128x128xi32>
      %47 = arith.cmpi eq, %20, %46 : vector<128x128xi32>
      %c2_11 = arith.constant 2 : index
      %c0_12 = arith.constant 0 : index
      %48 = vector.load %arg12[%c2_11, %c0_12] : memref<8x128xf32, #tpu.memory_space<vmem>>, vector<1x128xf32>
      %cst_13 = arith.constant 0.000000e+00 : f32
      %49 = vector.shape_cast %48 : vector<1x128xf32> to vector<1x128xf32>
      %50 = vector.broadcast %49 : vector<1x128xf32> to vector<128x128xf32>
      %51 = vector.broadcast %cst_13 : f32 to vector<128x128xf32>
      %52 = arith.select %47, %50, %51 : vector<128x128xi1>, vector<128x128xf32>
      %53 = arith.addf %42, %52 : vector<128x128xf32>
      %c3 = arith.constant 3 : index
      %c0_14 = arith.constant 0 : index
      %54 = vector.load %arg11[%c3, %c0_14] : memref<8x128xi32, #tpu.memory_space<vmem>>, vector<1x128xi32>
      %55 = vector.broadcast %21 : i32 to vector<1x128xi32>
      %56 = arith.subi %54, %55 : vector<1x128xi32>
      %57 = vector.broadcast %56 : vector<1x128xi32> to vector<128x128xi32>
      %58 = arith.cmpi eq, %20, %57 : vector<128x128xi32>
      %c3_15 = arith.constant 3 : index
      %c0_16 = arith.constant 0 : index
      %59 = vector.load %arg12[%c3_15, %c0_16] : memref<8x128xf32, #tpu.memory_space<vmem>>, vector<1x128xf32>
      %cst_17 = arith.constant 0.000000e+00 : f32
      %60 = vector.shape_cast %59 : vector<1x128xf32> to vector<1x128xf32>
      %61 = vector.broadcast %60 : vector<1x128xf32> to vector<128x128xf32>
      %62 = vector.broadcast %cst_17 : f32 to vector<128x128xf32>
      %63 = arith.select %58, %61, %62 : vector<128x128xi1>, vector<128x128xf32>
      %64 = arith.addf %53, %63 : vector<128x128xf32>
      %c4 = arith.constant 4 : index
      %c0_18 = arith.constant 0 : index
      %65 = vector.load %arg11[%c4, %c0_18] : memref<8x128xi32, #tpu.memory_space<vmem>>, vector<1x128xi32>
      %66 = vector.broadcast %21 : i32 to vector<1x128xi32>
      %67 = arith.subi %65, %66 : vector<1x128xi32>
      %68 = vector.broadcast %67 : vector<1x128xi32> to vector<128x128xi32>
      %69 = arith.cmpi eq, %20, %68 : vector<128x128xi32>
      %c4_19 = arith.constant 4 : index
      %c0_20 = arith.constant 0 : index
      %70 = vector.load %arg12[%c4_19, %c0_20] : memref<8x128xf32, #tpu.memory_space<vmem>>, vector<1x128xf32>
      %cst_21 = arith.constant 0.000000e+00 : f32
      %71 = vector.shape_cast %70 : vector<1x128xf32> to vector<1x128xf32>
      %72 = vector.broadcast %71 : vector<1x128xf32> to vector<128x128xf32>
      %73 = vector.broadcast %cst_21 : f32 to vector<128x128xf32>
      %74 = arith.select %69, %72, %73 : vector<128x128xi1>, vector<128x128xf32>
      %75 = arith.addf %64, %74 : vector<128x128xf32>
      %c5 = arith.constant 5 : index
      %c0_22 = arith.constant 0 : index
      %76 = vector.load %arg11[%c5, %c0_22] : memref<8x128xi32, #tpu.memory_space<vmem>>, vector<1x128xi32>
      %77 = vector.broadcast %21 : i32 to vector<1x128xi32>
      %78 = arith.subi %76, %77 : vector<1x128xi32>
      %79 = vector.broadcast %78 : vector<1x128xi32> to vector<128x128xi32>
      %80 = arith.cmpi eq, %20, %79 : vector<128x128xi32>
      %c5_23 = arith.constant 5 : index
      %c0_24 = arith.constant 0 : index
      %81 = vector.load %arg12[%c5_23, %c0_24] : memref<8x128xf32, #tpu.memory_space<vmem>>, vector<1x128xf32>
      %cst_25 = arith.constant 0.000000e+00 : f32
      %82 = vector.shape_cast %81 : vector<1x128xf32> to vector<1x128xf32>
      %83 = vector.broadcast %82 : vector<1x128xf32> to vector<128x128xf32>
      %84 = vector.broadcast %cst_25 : f32 to vector<128x128xf32>
      %85 = arith.select %80, %83, %84 : vector<128x128xi1>, vector<128x128xf32>
      %86 = arith.addf %75, %85 : vector<128x128xf32>
      %c6 = arith.constant 6 : index
      %c0_26 = arith.constant 0 : index
      %87 = vector.load %arg11[%c6, %c0_26] : memref<8x128xi32, #tpu.memory_space<vmem>>, vector<1x128xi32>
      %88 = vector.broadcast %21 : i32 to vector<1x128xi32>
      %89 = arith.subi %87, %88 : vector<1x128xi32>
      %90 = vector.broadcast %89 : vector<1x128xi32> to vector<128x128xi32>
      %91 = arith.cmpi eq, %20, %90 : vector<128x128xi32>
      %c6_27 = arith.constant 6 : index
      %c0_28 = arith.constant 0 : index
      %92 = vector.load %arg12[%c6_27, %c0_28] : memref<8x128xf32, #tpu.memory_space<vmem>>, vector<1x128xf32>
      %cst_29 = arith.constant 0.000000e+00 : f32
      %93 = vector.shape_cast %92 : vector<1x128xf32> to vector<1x128xf32>
      %94 = vector.broadcast %93 : vector<1x128xf32> to vector<128x128xf32>
      %95 = vector.broadcast %cst_29 : f32 to vector<128x128xf32>
      %96 = arith.select %91, %94, %95 : vector<128x128xi1>, vector<128x128xf32>
      %97 = arith.addf %86, %96 : vector<128x128xf32>
      %c7 = arith.constant 7 : index
      %c0_30 = arith.constant 0 : index
      %98 = vector.load %arg11[%c7, %c0_30] : memref<8x128xi32, #tpu.memory_space<vmem>>, vector<1x128xi32>
      %99 = vector.broadcast %21 : i32 to vector<1x128xi32>
      %100 = arith.subi %98, %99 : vector<1x128xi32>
      %101 = vector.broadcast %100 : vector<1x128xi32> to vector<128x128xi32>
      %102 = arith.cmpi eq, %20, %101 : vector<128x128xi32>
      %c7_31 = arith.constant 7 : index
      %c0_32 = arith.constant 0 : index
      %103 = vector.load %arg12[%c7_31, %c0_32] : memref<8x128xf32, #tpu.memory_space<vmem>>, vector<1x128xf32>
      %cst_33 = arith.constant 0.000000e+00 : f32
      %104 = vector.shape_cast %103 : vector<1x128xf32> to vector<1x128xf32>
      %105 = vector.broadcast %104 : vector<1x128xf32> to vector<128x128xf32>
      %106 = vector.broadcast %cst_33 : f32 to vector<128x128xf32>
      %107 = arith.select %102, %105, %106 : vector<128x128xi1>, vector<128x128xf32>
      %108 = arith.addf %97, %107 : vector<128x128xf32>
      %c0_34 = arith.constant 0 : index
      %c0_35 = arith.constant 0 : index
      %109 = vector.load %arg10[%c0_34, %c0_35] : memref<3x128xf32, #tpu.memory_space<vmem>>, vector<3x128xf32>
      %c0_36 = arith.constant 0 : index
      %c0_37 = arith.constant 0 : index
      %c0_38 = arith.constant 0 : index
      %110 = vector.load %arg8[%c0_36, %c0_37, %c0_38] : memref<1x3x128xf32, #tpu.memory_space<vmem>>, vector<1x3x128xf32>
      %111 = vector.shape_cast %110 : vector<1x3x128xf32> to vector<3x128xf32>
      %cst_39 = arith.constant dense<0.000000e+00> : vector<3x128xf32>
      %112 = tpu.matmul %111, %108, %cst_39 {dimension_numbers = #tpu.dot_dimension_numbers<[1], [0], [0], [1], [0, 0, 1, 1], [], []>} : vector<3x128xf32>, vector<128x128xf32>, vector<3x128xf32> -> vector<3x128xf32>
      %113 = arith.addf %109, %112 : vector<3x128xf32>
      %c0_40 = arith.constant 0 : index
      %c0_41 = arith.constant 0 : index
      %114 = vector.load %arg10[%c0_40, %c0_41] : memref<3x128xf32, #tpu.memory_space<vmem>>, vector<3x128xf32>
      tpu.vector_store %arg10[%c0_40, %c0_41], %113 {strides = array<i32>} : memref<3x128xf32, #tpu.memory_space<vmem>>, vector<3x128xf32>,
    } else {
    }
    %c7_i32 = arith.constant 7 : i32
    %17 = arith.cmpi eq, %arg2, %c7_i32 : i32
    %18 = arith.extui %17 : i1 to i32
    %c0_i32_2 = arith.constant 0 : i32
    %19 = arith.cmpi ne, %18, %c0_i32_2 : i32
    scf.if %19 {
      %c0 = arith.constant 0 : index
      %c0_3 = arith.constant 0 : index
      %20 = vector.load %arg10[%c0, %c0_3] : memref<3x128xf32, #tpu.memory_space<vmem>>, vector<3x128xf32>
      %c0_4 = arith.constant 0 : index
      %c0_5 = arith.constant 0 : index
      %c0_6 = arith.constant 0 : index
      %21 = vector.load %arg9[%c0_4, %c0_5, %c0_6] : memref<1x3x128xf32, #tpu.memory_space<vmem>>, vector<1x3x128xf32>
      %22 = vector.shape_cast %21 : vector<1x3x128xf32> to vector<3x128xf32>
      %23 = vector.shape_cast %20 : vector<3x128xf32> to vector<1x3x128xf32>
      tpu.vector_store %arg9[%c0_4, %c0_5, %c0_6], %23 {strides = array<i32>} : memref<1x3x128xf32, #tpu.memory_space<vmem>>, vector<1x3x128xf32>,
    } else {
    }
    return
  }
  func.func @transform_0(%arg0: i32, %arg1: i32, %arg2: i32, %arg3: memref<16xi32, #tpu.memory_space<smem>>, %arg4: memref<16xi32, #tpu.memory_space<smem>>, %arg5: memref<16xi32, #tpu.memory_space<smem>>) -> (i32, i32) {
    %c0_i32 = arith.constant 0 : i32
    %c0_i32_0 = arith.constant 0 : i32
    return %c0_i32, %arg1 : i32, i32
  }
  func.func @transform_1(%arg0: i32, %arg1: i32, %arg2: i32, %arg3: memref<16xi32, #tpu.memory_space<smem>>, %arg4: memref<16xi32, #tpu.memory_space<smem>>, %arg5: memref<16xi32, #tpu.memory_space<smem>>) -> (i32, i32, i32) {
    %c0_i32 = arith.constant 0 : i32
    %c0_i32_0 = arith.constant 0 : i32
    return %arg0, %c0_i32, %arg1 : i32, i32, i32
  }
  func.func @transform_2(%arg0: i32, %arg1: i32, %arg2: i32, %arg3: memref<16xi32, #tpu.memory_space<smem>>, %arg4: memref<16xi32, #tpu.memory_space<smem>>, %arg5: memref<16xi32, #tpu.memory_space<smem>>) -> (i32, i32, i32) {
    %c8_i32 = arith.constant 8 : i32
    %0 = arith.muli %arg0, %c8_i32 : i32
    %1 = arith.addi %0, %arg1 : i32
    %2 = arith.index_cast %1 : i32 to index
    %3 = memref.load %arg3[%2] : memref<16xi32, #tpu.memory_space<smem>>
    %4 = arith.addi %3, %arg2 : i32
    %c0_i32 = arith.constant 0 : i32
    %c0_i32_0 = arith.constant 0 : i32
    return %arg0, %c0_i32, %4 : i32, i32, i32
  }
  func.func @transform_3(%arg0: i32, %arg1: i32, %arg2: i32, %arg3: memref<16xi32, #tpu.memory_space<smem>>, %arg4: memref<16xi32, #tpu.memory_space<smem>>, %arg5: memref<16xi32, #tpu.memory_space<smem>>) -> (i32, i32, i32) {
    %c0_i32 = arith.constant 0 : i32
    %c0_i32_0 = arith.constant 0 : i32
    return %arg0, %c0_i32, %arg1 : i32, i32, i32
  }
}

</mosaic_0001>

<bundles_post_ra>
// kernel: tpu_custom_call.1
= control target key start
LH: loop header
LB: loop body
LE: loop exit
PB: predicated region body
PF: predicated region fallthrough
CT: control target
= control target key end

     0   :  { %s1235_s27 = smov [#allocation6]   ;;  %s1236_s28 = smov [#allocation7]   ;;  %s1971_s0 = inlined_call_operand.vmem [shape: s32[16], index: 0, kind: input, shape index: {}]   ;;  %s1972_s3 = inlined_call_operand.vmem [shape: f32[3,1024], index: 3, kind: input, shape index: {}]   ;;  %s1973_s4 = inlined_call_operand.vmem [shape: f32[2,3,1024], index: 4, kind: input, shape index: {}]   ;;  %s1974_s5 = inlined_call_operand.vmem [shape: f32[2,3,1024], index: 5, kind: input, shape index: {}]   ;;  %s1975_s6 = inlined_call_operand.vmem [shape: f32[2,3,1024], index: 6, kind: output, shape index: {}]   ;;  %s1976_s1 = inlined_call_operand.vmem [shape: s32[16], index: 1, kind: input, shape index: {}]   ;;  %s1977_s2 = inlined_call_operand.vmem [shape: s32[16], index: 2, kind: input, shape index: {}]  }
   0x1   :  { %s12_s23 = sshll.u32 %s1971_s0, 4  ;;  %s17_s26 = sshll.u32 %s1976_s1, 4  ;;  %s13_s23 = int_to_ptr.vmem [resolvable:$true] %s12_s23  ;;  %s18_s26 = int_to_ptr.vmem [resolvable:$true] %s17_s26 }
   0x2   :  { %15 = dma.vmem_to_smem %s13_s23, 16, %s1235_s27, [#allocation5] }
   0x3   :  { %20 = dma.vmem_to_smem %s18_s26, 16, %s1236_s28, [#allocation5] }
   0x4   :  { %s22_s7 = sshll.u32 %s1977_s2, 4  ;;  %s1237_s8 = smov [#allocation8]   ;;  %s23_s7 = int_to_ptr.vmem [resolvable:$true] %s22_s7 }
   0x5   :  { %25 = dma.vmem_to_smem %s23_s7, 16, %s1237_s8, [#allocation5] }
   0x6   :  { %1205 = dma.done.wait [#allocation5], 48 }
   0x7   :  { %1206 = vsyncadd [#allocation5], 4294967248 }
   0x8   :  { %28 = sfence }
   0x9   :  { %s1284_s0 = smov 0   ;;  %s1286_s9 = smov 0  }
   0xa   :  { %s1288_s1 = smov 0   ;;  %s1290_s10 = smov 0  }
   0xb   :  { %s1292_s11 = smov 0   ;;  %s1294_s12 = smov 0  }
   0xc   :  { %s1296_s13 = smov 0  }
   0xd LB: > { %s46_s2 = sadd.s32 1, %s1221_s10  ;;  %s49_s14 = sadd.s32 1, %s1225_s11  ;;  %s1233_s13 = sphi %s1296_s13, %s34_s13   ;;  %s1229_s12 = sphi %s1294_s12, %s2005_s12   ;;  %s1225_s11 = sphi %s1292_s11, %s2004_s11   ;;  %s1221_s10 = sphi %s1290_s10, %s2003_s10   ;;  %s1217_s1 = sphi %s1288_s1, %s2002_s1   ;;  %s1213_s9 = sphi %s1286_s9, %s2001_s9   ;;  %s1209_s0 = sphi %s1284_s0, %s2000_s0  }
   0xe   : > { %p47_p0 = scmp.ge.s32.totalorder %s46_s2, 8  ;;  %p1055_p1 = scmp.ge.s32.totalorder %s1233_s13, 1 }
   0xf   : > { %p224_p2 = scmp.lt.s32.totalorder %s1233_s13, 129  ;;  %s53_s15 = sadd.s32 1, %s1229_s12 }
  0x10   : > { %s2007_s2 = smov (%p47_p0, %s46_s2), 0  ;;  %s2009_s14 = smov (!%p47_p0, %s49_s14), %s1225_s11 }
  0x11   : > { %p225_p3 = pnand %p1055_p1, %p224_p2  ;;  %p51_p4 = scmp.ge.s32.totalorder %s2009_s14, 8 }
  0x12   : > { %p270_p6 = scmp.lt.s32.totalorder (!%p225_p3), %s1213_s9, 7  ;;  %p274_p7 = scmp.lt.s32.totalorder (!%p225_p3), %s1217_s1, 1 }
  0x13   : > { %s2011_s14 = smov (%p51_p4, %s2009_s14), 0  ;;  %s2013_s15 = smov (!%p51_p4, %s53_s15), %s1229_s12 }
  0x14   : > { %p55_p5 = scmp.ge.s32.totalorder %s2013_s15, 2  ;;  %228 = sbr.rel (%p225_p3) target bundleno = 341 (0x155), region = 32 }
  0x15   : > { %s1059_s16 = sshll.u32 (!%p225_p3), %s1217_s1, 3  ;;  %p1065_p9 = scmp.ne.s32.totalorder (!%p225_p3), %s1209_s0, 0 }
  0x16   : > { %s2015_s15 = smov (%p55_p5, %s2013_s15), 0  ;;  %s1328_s19 = sadd.s32 (!%p225_p3), %s1213_s9, %s1059_s16 }
  0x17   : > { %s284_s25 = sld [smem:[#allocation6 + %s1328_s19]] (!%p225_p3) }
  0x19   : > { %s271_s17 = scalar_select %p270_p6, %s1213_s9, 7 }
  0x1a   : > { %s2017_s1 = smov (!%p274_p7, %s1217_s1), 1 }
  0x1b   : > { %s1056_s18 = sshll.u32 %s271_s17, 2  ;;  %s1057_s23 = sshll.u32 %s2017_s1, 3 }
  0x1c   : > { %s273_s22 = scalar_lea.vmem %s1972_s3, %s1056_s18  ;;  %s279_s24 = sadd.s32 %s1057_s23, %s271_s17 }
  0x1d   : > { %s1058_s26 = sshll.u32 %s279_s24, 2  ;;  %s285_s9 = sadd.s32 %s1209_s0, %s284_s25 }
  0x1e   : > { %s281_s29 = scalar_lea.vmem %s1973_s4, %s1058_s26  ;;  %s1340_s8 = scalar_lea.vmem %s1975_s6, %s1058_s26 }
  0x1f   : > { %p288_p8 = scmp.lt.s32.totalorder %s285_s9, 7 }
  0x20   : > { %311 = sbr.rel (%p1065_p9) target bundleno = 75 (0x4b), region = 36 }
  0x21   : > { %s2019_s9 = smov (!%p288_p8, %s285_s9), 7 }
  0x22   : > { %s291_s16 = sadd.s32 %s1057_s23, %s2019_s9 }
  0x23   : > { %s1061_s20 = sshll.u32 %s291_s16, 2 }
  0x24   : > { %s1346_s1 = scalar_lea.vmem %s1974_s5, %s1061_s20 }
  0x25   : > { %v313_v0 = vld [vmem:[%s273_s22] sm:$0x7]  ;;  %v1238_v2 = vmov 0.0   ;;  %vm1979_vm0 = vcmask 1040384   ;;  %vm1978_vm1 = vcmask 1041408   ;;  %vm420_vm4 = vcmask 1042432  }
  0x26   : > { %v314_v1 = vld [vmem:[%s281_s29] sm:$0x7]  ;;  %312 = vst [vmem:[#allocation2] sm:$0x7] %v1238_v2  ;;  %vm422_vm5 = vcmask 1043456   ;;  %vm424_vm9 = vcmask 1044480  }
  0x27   : > { %v315_v3 = vadd.f32 %v314_v1, %v313_v0  ;;  %v1239_v21 = vmov 0   ;;  %vm426_vm11 = vcmask 1045504   ;;  %vm1980_vm14 = vcmask 1046528  }
  0x29   : > { %v316_v4 = vfloor.f32 %v315_v3 }
  0x2b   : > { %v1071_v5 = vcvt.f32.s32 %v316_v4  ;;  %v1349_v6 = vsub.f32 %v315_v3, %v316_v4 }
  0x2d   : > { %v327_v7 = vmul.u32 160, %v1071_v5  ;;  %v328_v8 = vmul.u32 16, %v1071_v5  ;;  %v1351_v9 = vadd.s32 1, %v1071_v5  ;;  %v331_v10 = vrot.slane %v1071_v5, 2 }
  0x2e   : > { %v1354_v11 = vsub.f32 1.0, %v1349_v6  ;;  %vm320_vm2 = vcmp.ge.s32.totalorder %v1071_v5, 0  ;;  %vm323_vm3 = vcmp.lt.s32.totalorder %v1071_v5, 10  ;;  %vm321_vm6 = vcmp.lt.s32.totalorder %v1071_v5, 6 }
  0x2f   : > { %v329_v12 = vrot.slane %v328_v8, 1  ;;  %v353_v13 = vrot.slane %v1351_v9, 2  ;;  %v366_v14 = vmul.u32 16, %v1351_v9  ;;  %v386_v15 = vmul.u32 160, %v1351_v9  ;;  %vm324_vm7 = vmand %vm320_vm2, %vm323_vm3 }
  0x30   : > { %vm325_vm8 = vcmp.lt.s32.totalorder %v1071_v5, 16  ;;  %v342_v16 = vrot.slane %v1354_v11, 1  ;;  %v1362_v17 = vrot.slane %v1354_v11, 2  ;;  %v333_v22 = vsel %vm324_vm7, 1, %v1239_v21  ;;  %vm1369_vm15 = vmand %vm320_vm2, %vm321_vm6 }
  0x31   : > { %v330_v18 = vadd.s32 %v329_v12, %v327_v7  ;;  %v367_v19 = vrot.slane %v366_v14, 1  ;;  %v387_v20 = vadd.s32 %v386_v15, %v329_v12  ;;  %vm326_vm10 = vmand %vm320_vm2, %vm325_vm8  ;;  %v334_v23 = vrot.slane %v333_v22, 1 }
  0x32   : > { %v337_v24 = vsel %vm326_vm10, 1, %v1239_v21  ;;  %vm350_vm12 = vcmp.ge.s32.totalorder %v1351_v9, 0  ;;  %vm351_vm13 = vcmp.lt.s32.totalorder %v1351_v9, 16  ;;  %v344_v33 = vmul.f32 %v342_v16, %v1354_v11 }
  0x33   : > { %v332_v25 = vadd.s32 %v331_v10, %v330_v18  ;;  %v354_v26 = vadd.s32 %v353_v13, %v330_v18  ;;  %v368_v27 = vadd.s32 %v367_v19, %v327_v7  ;;  %v388_v28 = vadd.s32 %v387_v20, %v331_v10  ;;  %vm352_vm7 = vmand %vm350_vm12, %vm351_vm13 }
  0x34   : > { %v394_v29 = vadd.s32 %v387_v20, %v353_v13  ;;  %v398_v30 = vadd.s32 %v386_v15, %v367_v19  ;;  %v338_v32 = vrot.slane %v337_v24, 2  ;;  %vm1374_vm3 = vcmp.ne.s32.totalorder %v334_v23, 0 }
  0x35   : > { %v369_v34 = vadd.s32 %v368_v27, %v331_v10  ;;  %v380_v35 = vadd.s32 %v368_v27, %v353_v13  ;;  %v409_v36 = vrot.slane %v354_v26, 7  ;;  %v412_v40 = vrot.slane %v388_v28, 4  ;;  %vm336_vm6 = vmand %vm1369_vm15, %vm1374_vm3 }
  0x36   : > { %v399_v38 = vadd.s32 %v398_v30, %v331_v10  ;;  %v405_v39 = vadd.s32 %v398_v30, %v353_v13  ;;  %vm1382_vm2 = vcmp.ne.s32.totalorder %v338_v32, 0  ;;  %v413_v44 = vrot.slane %v394_v29, 3 }
  0x37   : > { %v410_v42 = vrot.slane %v369_v34, 6  ;;  %v411_v43 = vrot.slane %v380_v35, 5  ;;  %v417_v45 = vsel %vm1979_vm0, %v332_v25, %v409_v36  ;;  %v347_v47 = vmul.f32 %v1362_v17, %v344_v33  ;;  %vm1401_vm8 = vmand %vm336_vm6, %vm1382_vm2 }
  0x38   : > { %v414_v46 = vrot.slane %v399_v38, 2  ;;  %v355_v48 = vsel %vm352_vm7, 1, %v1239_v21  ;;  %v360_v49 = vrot.slane %v1349_v6, 2  ;;  %v415_v50 = vrot.slane %v405_v39, 1 }
  0x39   : > { %v419_v51 = vsel %vm1978_vm1, %v417_v45, %v410_v42  ;;  %v356_v53 = vrot.slane %v355_v48, 2  ;;  %vm364_vm10 = vcmp.lt.s32.totalorder %v1351_v9, 10  ;;  %v375_v56 = vrot.slane %v1349_v6, 1 }
  0x3a   : > { %v421_v54 = vsel %vm420_vm4, %v419_v51, %v411_v43  ;;  %v362_v55 = vmul.f32 %v360_v49, %v344_v33  ;;  %vm365_vm13 = vmand %vm350_vm12, %vm364_vm10  ;;  %vm384_vm7 = vcmp.lt.s32.totalorder %v1351_v9, 6  ;;  %v391_v61 = vmul.f32 %v342_v16, %v1349_v6 }
  0x3b   : > { %v423_v57 = vsel %vm422_vm5, %v421_v54, %v412_v40  ;;  %vm1412_vm1 = vcmp.ne.s32.totalorder %v356_v53, 0  ;;  %v370_v59 = vsel %vm365_vm13, 1, %v1239_v21  ;;  %vm1418_vm0 = vmand %vm350_vm12, %vm384_vm7  ;;  %v348_v63 = vsel %vm1401_vm8, %v347_v47, 0.0 }
  0x3c   : > { %v425_v62 = vsel %vm424_vm9, %v423_v57, %v413_v44  ;;  %vm1433_vm10 = vmand %vm336_vm6, %vm1412_vm1  ;;  %v371_v1 = vrot.slane %v370_v59, 1  ;;  %v377_v2 = vmul.f32 %v375_v56, %v1354_v11  ;;  %v392_v5 = vmul.f32 %v391_v61, %v1362_v17 }
  0x3d   : > { %v427_v3 = vsel %vm426_vm11, %v425_v62, %v414_v46  ;;  %v363_v4 = vsel %vm1433_vm10, %v362_v55, 0.0  ;;  %vm389_vm12 = vmand %vm1418_vm0, %vm1374_vm3  ;;  %v402_v7 = vmul.f32 %v375_v56, %v1349_v6  ;;  %v396_v12 = vmul.f32 %v391_v61, %v360_v49 }
  0x3e   : > { %v429_v8 = vsel %vm1980_vm14, %v427_v3, %v415_v50  ;;  %vm1448_vm6 = vcmp.ne.s32.totalorder %v371_v1, 0  ;;  %v378_v10 = vmul.f32 %v377_v2, %v1362_v17  ;;  %v382_v11 = vmul.f32 %v377_v2, %v360_v49  ;;  %vm390_vm8 = vmand %vm389_vm12, %vm1382_vm2 }
  0x3f   : > { %430 = vst [vmem:[#allocation3] sm:$0xff] %v429_v8  ;;  %vm373_vm13 = vmand %vm1369_vm15, %vm1448_vm6  ;;  %v393_v6 = vsel %vm390_vm8, %v392_v5, 0.0  ;;  %v432_v13 = vrot.slane %v363_v4, 7  ;;  %v403_v15 = vmul.f32 %v402_v7, %v1362_v17  ;;  %vm1997_vm14 = vcmask 1040384  }
  0x40   : > { %vm374_vm7 = vmand %vm373_vm13, %vm1382_vm2  ;;  %v407_v19 = vmul.f32 %v402_v7, %v360_v49  ;;  %v441_v21 = vrot.slane %v393_v6, 4 }
  0x41   : > { %v379_v14 = vsel %vm374_vm7, %v378_v10, 0.0  ;;  %vm381_vm10 = vmand %vm373_vm13, %vm1412_vm1  ;;  %v452_v16 = vsel %vm1997_vm14, %v348_v63, %v432_v13  ;;  %vm1998_vm13 = vcmask 1041408  }
  0x42   : > { %v383_v18 = vsel %vm381_vm10, %v382_v11, 0.0  ;;  %vm395_vm15 = vmand %vm389_vm12, %vm1412_vm1  ;;  %v435_v20 = vrot.slane %v379_v14, 6 }
  0x43   : > { %v397_v22 = vsel %vm395_vm15, %v396_v12, 0.0  ;;  %vm400_vm8 = vmand %vm1418_vm0, %vm1448_vm6  ;;  %v438_v17 = vrot.slane %v383_v18, 5  ;;  %vm1999_vm0 = vcmask 1046528  }
  0x44   : > { %vm401_vm14 = vmand %vm400_vm8, %vm1382_vm2  ;;  %v444_v23 = vrot.slane %v397_v22, 3  ;;  %v453_v24 = vsel %vm1998_vm13, %v452_v16, %v435_v20 }
  0x45   : > { %v404_v25 = vsel %vm401_vm14, %v403_v15, 0.0  ;;  %vm406_vm3 = vmand %vm400_vm8, %vm1412_vm1  ;;  %v454_v26 = vsel %vm420_vm4, %v453_v24, %v438_v17 }
  0x46   : > { %v408_v27 = vsel %vm406_vm3, %v407_v19, 0.0  ;;  %v447_v28 = vrot.slane %v404_v25, 2  ;;  %v455_v29 = vsel %vm422_vm5, %v454_v26, %v441_v21 }
  0x47   : > { %v450_v30 = vrot.slane %v408_v27, 1  ;;  %v456_v31 = vsel %vm424_vm9, %v455_v29, %v444_v23 }
  0x48   : > { %v457_v32 = vsel %vm426_vm11, %v456_v31, %v447_v28 }
  0x49   : > { %v458_v33 = vsel %vm1999_vm0, %v457_v32, %v450_v30 }
  0x4a   : > { %459 = vst [vmem:[#allocation4] sm:$0xff] %v458_v33 }
  0x4b PF: > { %s460_s17 = sld [smem:[#allocation6 + %s1328_s19]] }
  0x4c   : > { %s462_s22 = sld [smem:[#allocation7 + %s1328_s19]] }
  0x4d   : > { %s464_s23 = sld [smem:[#allocation8 + %s1328_s19]] }
  0x51   : > { %s461_s24 = sadd.s32 %s1209_s0, %s460_s17 }
  0x52   : > { %p463_p10 = scmp.ge.s32.totalorder %s461_s24, %s462_s22 }
  0x53   : > { %p465_p11 = scmp.le.s32.totalorder %s461_s24, %s464_s23 }
  0x55   : > { %p466_p12 = pnand %p465_p11, %p463_p10 }
  0x56   : > { %s1066_s25 = sshll.u32 (!%p466_p12), %s461_s24, 7 }
  0x57   : > { %469 = sbr.rel (%p466_p12) target bundleno = 332 (0x14c), region = 40 }
  0x5c   : > { %v470_v34 = vlaneseq  ;;  %v488_v35 = vld [vmem:[#allocation3] sm:$0x1]  ;;  %v489_v36 = vstv %s1066_s25  ;;  %v1495_v37 = vld [vmem:[#allocation4] ss:$0 sm:$0xff]  ;;  %v526_v38 = vld [vmem:[#allocation3 + $0x1] sm:$0x1] }
  0x5d   : > { %v490_v40 = vsub.s32 %v488_v35, %v489_v36  ;;  %v527_v41 = vsub.s32 %v526_v38, %v489_v36  ;;  %v1499_v42 = vld [vmem:[#allocation4 + $0x1] ss:$0 sm:$0xff]  ;;  %v579_v43 = vld [vmem:[#allocation3 + $0x2] sm:$0x1]  ;;  %v1501_v45 = vld [vmem:[#allocation4 + $0x2] ss:$0 sm:$0xff] }
  0x5e   : > { %v1497_v39 = vshrl.u32 %v470_v34, 7  ;;  %v580_v44 = vsub.s32 %v579_v43, %v489_v36  ;;  %v632_v46 = vld [vmem:[#allocation3 + $0x3] sm:$0x1]  ;;  %v1510_v52 = vld [vmem:[#allocation4 + $0x3] ss:$0 sm:$0xff] }
  0x5f   : > { %v1504_v48 = vperm.slane %v490_v40, 0  ;;  %v1506_v49 = vperm.slane %v527_v41, 0  ;;  %v633_v50 = vsub.s32 %v632_v46, %v489_v36  ;;  %v685_v53 = vld [vmem:[#allocation3 + $0x4] sm:$0x1]  ;;  %v1519_v57 = vld [vmem:[#allocation4 + $0x4] ss:$0 sm:$0xff] }
  0x60   : > { %v486_v47 = vadd.s32 120, %v1497_v39  ;;  %v1508_v51 = vperm.slane %v580_v44, 0  ;;  %v1513_v54 = vadd.s32 112, %v1497_v39  ;;  %v686_v56 = vsub.s32 %v685_v53, %v489_v36  ;;  %v738_v60 = vld [vmem:[#allocation3 + $0x5] sm:$0x1] }
  0x61   : > { %v1517_v55 = vperm.slane %v633_v50, 0  ;;  %v791_v0 = vld [vmem:[#allocation3 + $0x6] sm:$0x1]  ;;  %v739_v2 = vsub.s32 %v738_v60, %v489_v36  ;;  %v1531_v3 = vld [vmem:[#allocation4 + $0x5] ss:$0 sm:$0xff]  ;;  %v484_v29 = vadd.s32 104, %v1497_v39 }
  0x62   : > { %vm507_vm1 = vcmp.eq.s32.totalorder %v486_v47, %v1504_v48  ;;  %vm544_vm4 = vcmp.eq.s32.totalorder %v486_v47, %v1506_v49  ;;  %vm597_vm5 = vcmp.eq.s32.totalorder %v486_v47, %v1508_v51  ;;  %vm506_vm9 = vcmp.eq.s32.totalorder %v1513_v54, %v1504_v48  ;;  %v1535_v8 = vld [vmem:[#allocation4 + $0x6] ss:$0 sm:$0xff]  ;;  %v844_v9 = vld [vmem:[#allocation3 + $0x7] sm:$0x1]  ;;  %v1546_v14 = vld [vmem:[#allocation4 + $0x7] ss:$0 sm:$0xff] }
  0x63   : > { %v525_v58 = vsel %vm507_vm1, %v1495_v37, 0.0  ;;  %v562_v59 = vsel %vm544_vm4, %v1499_v42, 0.0  ;;  %v615_v62 = vsel %vm597_vm5, %v1501_v45, 0.0  ;;  %vm650_vm11 = vcmp.eq.s32.totalorder %v486_v47, %v1517_v55 }
  0x64   : > { %v578_v61 = vadd.f32 %v562_v59, %v525_v58  ;;  %v1528_v63 = vperm.slane %v686_v56, 0  ;;  %v668_v1 = vsel %vm650_vm11, %v1510_v52, 0.0  ;;  %v792_v4 = vsub.s32 %v791_v0, %v489_v36 }
  0x65   : > { %v524_v5 = vsel %vm506_vm9, %v1495_v37, 0.0  ;;  %vm543_vm12 = vcmp.eq.s32.totalorder %v1513_v54, %v1506_v49  ;;  %vm596_vm6 = vcmp.eq.s32.totalorder %v1513_v54, %v1508_v51  ;;  %v1542_v11 = vperm.slane %v739_v2, 0 }
  0x66   : > { %v631_v7 = vadd.f32 %v615_v62, %v578_v61  ;;  %vm703_vm2 = vcmp.eq.s32.totalorder %v486_v47, %v1528_v63  ;;  %v1544_v6 = vperm.slane %v792_v4, 0  ;;  %v845_v12 = vsub.s32 %v844_v9, %v489_v36 }
  0x67   : > { %v721_v10 = vsel %vm703_vm2, %v1519_v57, 0.0  ;;  %v561_v15 = vsel %vm543_vm12, %v1499_v42, 0.0  ;;  %v614_v16 = vsel %vm596_vm6, %v1501_v45, 0.0  ;;  %vm649_vm7 = vcmp.eq.s32.totalorder %v1513_v54, %v1517_v55 }
  0x68   : > { %v684_v13 = vadd.f32 %v668_v1, %v631_v7  ;;  %vm756_vm10 = vcmp.eq.s32.totalorder %v486_v47, %v1542_v11  ;;  %vm809_vm15 = vcmp.eq.s32.totalorder %v486_v47, %v1544_v6  ;;  %v1554_v18 = vperm.slane %v845_v12, 0 }
  0x69   : > { %v577_v19 = vadd.f32 %v561_v15, %v524_v5  ;;  %v774_v21 = vsel %vm756_vm10, %v1531_v3, 0.0  ;;  %v827_v22 = vsel %vm809_vm15, %v1535_v8, 0.0  ;;  %v667_v17 = vsel %vm649_vm7, %v1510_v52, 0.0 }
  0x6a   : > { %v737_v20 = vadd.f32 %v721_v10, %v684_v13  ;;  %vm862_vm8 = vcmp.eq.s32.totalorder %v486_v47, %v1554_v18  ;;  %vm702_vm14 = vcmp.eq.s32.totalorder %v1513_v54, %v1528_v63  ;;  %vm755_vm13 = vcmp.eq.s32.totalorder %v1513_v54, %v1542_v11 }
  0x6b   : > { %v630_v23 = vadd.f32 %v614_v16, %v577_v19  ;;  %v880_v25 = vsel %vm862_vm8, %v1546_v14, 0.0  ;;  %v720_v26 = vsel %vm702_vm14, %v1519_v57, 0.0  ;;  %v773_v28 = vsel %vm755_vm13, %v1531_v3, 0.0 }
  0x6c   : > { %v790_v24 = vadd.f32 %v774_v21, %v737_v20  ;;  %vm808_vm3 = vcmp.eq.s32.totalorder %v1513_v54, %v1544_v6  ;;  %vm861_vm0 = vcmp.eq.s32.totalorder %v1513_v54, %v1554_v18  ;;  %v1574_v32 = vadd.s32 96, %v1497_v39 }
  0x6d   : > { %v683_v27 = vadd.f32 %v667_v17, %v630_v23  ;;  %v826_v31 = vsel %vm808_vm3, %v1535_v8, 0.0  ;;  %vm505_vm1 = vcmp.eq.s32.totalorder %v484_v29, %v1504_v48  ;;  %vm542_vm4 = vcmp.eq.s32.totalorder %v484_v29, %v1506_v49 }
  0x6e   : > { %v843_v30 = vadd.f32 %v827_v22, %v790_v24  ;;  %vm595_vm5 = vcmp.eq.s32.totalorder %v484_v29, %v1508_v51  ;;  %v523_v35 = vsel %vm505_vm1, %v1495_v37, 0.0  ;;  %v560_v36 = vsel %vm542_vm4, %v1499_v42, 0.0 }
  0x6f   : > { %v736_v33 = vadd.f32 %v720_v26, %v683_v27  ;;  %v613_v38 = vsel %vm595_vm5, %v1501_v45, 0.0  ;;  %v576_v41 = vadd.f32 %v560_v36, %v523_v35  ;;  %vm648_vm9 = vcmp.eq.s32.totalorder %v484_v29, %v1517_v55 }
  0x70   : > { %v896_v34 = vadd.f32 %v880_v25, %v843_v30  ;;  %vm701_vm11 = vcmp.eq.s32.totalorder %v484_v29, %v1528_v63  ;;  %v879_v43 = vsel %vm861_vm0, %v1546_v14, 0.0  ;;  %v666_v44 = vsel %vm648_vm9, %v1510_v52, 0.0 }
  0x71   : > { %v789_v40 = vadd.f32 %v773_v28, %v736_v33  ;;  %vm754_vm2 = vcmp.eq.s32.totalorder %v484_v29, %v1542_v11  ;;  %v629_v47 = vadd.f32 %v613_v38, %v576_v41  ;;  %v719_v50 = vsel %vm701_vm11, %v1519_v57, 0.0 }
  0x72   : > { %899 = vmatpush.msra.mxu0 %v896_v34  ;;  %vm807_vm12 = vcmp.eq.s32.totalorder %v484_v29, %v1544_v6  ;;  %vm860_vm6 = vcmp.eq.s32.totalorder %v484_v29, %v1554_v18  ;;  %vm504_vm7 = vcmp.eq.s32.totalorder %v1574_v32, %v1504_v48  ;;  %vm541_vm10 = vcmp.eq.s32.totalorder %v1574_v32, %v1506_v49 }
  0x73   : > { %v842_v46 = vadd.f32 %v826_v31, %v789_v40  ;;  %vm594_vm15 = vcmp.eq.s32.totalorder %v1574_v32, %v1508_v51  ;;  %v682_v54 = vadd.f32 %v666_v44, %v629_v47  ;;  %v772_v56 = vsel %vm754_vm2, %v1531_v3, 0.0 }
  0x74   : > { %v522_v58 = vsel %vm504_vm7, %v1495_v37, 0.0  ;;  %v559_v59 = vsel %vm541_vm10, %v1499_v42, 0.0  ;;  %v612_v60 = vsel %vm594_vm15, %v1501_v45, 0.0  ;;  %vm647_vm8 = vcmp.eq.s32.totalorder %v1574_v32, %v1517_v55 }
  0x75   : > { %v895_v53 = vadd.f32 %v879_v43, %v842_v46  ;;  %vm700_vm14 = vcmp.eq.s32.totalorder %v1574_v32, %v1528_v63  ;;  %v735_v61 = vadd.f32 %v719_v50, %v682_v54  ;;  %v825_v62 = vsel %vm807_vm12, %v1535_v8, 0.0 }
  0x76   : > { %v878_v0 = vsel %vm860_vm6, %v1546_v14, 0.0  ;;  %v575_v1 = vadd.f32 %v559_v59, %v522_v58  ;;  %v665_v2 = vsel %vm647_vm8, %v1510_v52, 0.0  ;;  %v718_v4 = vsel %vm700_vm14, %v1519_v57, 0.0 }
  0x77   : > { %900 = vmatpush.msra.mxu0 %v895_v53  ;;  %vm753_vm13 = vcmp.eq.s32.totalorder %v1574_v32, %v1542_v11  ;;  %v482_v5 = vadd.s32 88, %v1497_v39  ;;  %v788_v7 = vadd.f32 %v772_v56, %v735_v61  ;;  %vm806_vm3 = vcmp.eq.s32.totalorder %v1574_v32, %v1544_v6 }
  0x78   : > { %v628_v9 = vadd.f32 %v612_v60, %v575_v1  ;;  %vm859_vm0 = vcmp.eq.s32.totalorder %v1574_v32, %v1554_v18  ;;  %v771_v10 = vsel %vm753_vm13, %v1531_v3, 0.0  ;;  %v824_v17 = vsel %vm806_vm3, %v1535_v8, 0.0 }
  0x79   : > { %vm503_vm1 = vcmp.eq.s32.totalorder %v482_v5, %v1504_v48  ;;  %vm540_vm4 = vcmp.eq.s32.totalorder %v482_v5, %v1506_v49  ;;  %vm593_vm5 = vcmp.eq.s32.totalorder %v482_v5, %v1508_v51  ;;  %v841_v12 = vadd.f32 %v825_v62, %v788_v7 }
  0x7a   : > { %v681_v13 = vadd.f32 %v665_v2, %v628_v9  ;;  %v521_v15 = vsel %vm503_vm1, %v1495_v37, 0.0  ;;  %v558_v16 = vsel %vm540_vm4, %v1499_v42, 0.0  ;;  %v611_v20 = vsel %vm593_vm5, %v1501_v45, 0.0 }
  0x7b   : > { %v574_v19 = vadd.f32 %v558_v16, %v521_v15  ;;  %vm646_vm9 = vcmp.eq.s32.totalorder %v482_v5, %v1517_v55  ;;  %vm699_vm11 = vcmp.eq.s32.totalorder %v482_v5, %v1528_v63  ;;  %v894_v21 = vadd.f32 %v878_v0, %v841_v12 }
  0x7c   : > { %v734_v22 = vadd.f32 %v718_v4, %v681_v13  ;;  %v664_v23 = vsel %vm646_vm9, %v1510_v52, 0.0  ;;  %vm752_vm2 = vcmp.eq.s32.totalorder %v482_v5, %v1542_v11  ;;  %vm805_vm12 = vcmp.eq.s32.totalorder %v482_v5, %v1544_v6 }
  0x7d   : > { %v627_v24 = vadd.f32 %v611_v20, %v574_v19  ;;  %vm858_vm6 = vcmp.eq.s32.totalorder %v482_v5, %v1554_v18  ;;  %901 = vmatpush.msra.mxu0 %v894_v21  ;;  %v877_v26 = vsel %vm859_vm0, %v1546_v14, 0.0  ;;  %v717_v27 = vsel %vm699_vm11, %v1519_v57, 0.0 }
  0x7e   : > { %v787_v25 = vadd.f32 %v771_v10, %v734_v22  ;;  %v770_v28 = vsel %vm752_vm2, %v1531_v3, 0.0  ;;  %v823_v30 = vsel %vm805_vm12, %v1535_v8, 0.0  ;;  %v876_v31 = vsel %vm858_vm6, %v1546_v14, 0.0 }
  0x7f   : > { %v680_v29 = vadd.f32 %v664_v23, %v627_v24  ;;  %v481_v33 = vadd.s32 80, %v1497_v39  ;;  %v1642_v35 = vadd.s32 72, %v1497_v39  ;;  %v1645_v36 = vadd.s32 64, %v1497_v39 }
  0x80   : > { %v840_v34 = vadd.f32 %v824_v17, %v787_v25  ;;  %v1648_v32 = vadd.s32 56, %v1497_v39  ;;  %v1661_v53 = vadd.s32 48, %v1497_v39  ;;  %v1664_v54 = vadd.s32 40, %v1497_v39 }
  0x81   : > { %v733_v38 = vadd.f32 %v717_v27, %v680_v29  ;;  %vm502_vm7 = vcmp.eq.s32.totalorder %v481_v33, %v1504_v48  ;;  %vm539_vm10 = vcmp.eq.s32.totalorder %v481_v33, %v1506_v49  ;;  %vm592_vm15 = vcmp.eq.s32.totalorder %v481_v33, %v1508_v51 }
  0x82   : > { %v893_v40 = vadd.f32 %v877_v26, %v840_v34  ;;  %v520_v41 = vsel %vm502_vm7, %v1495_v37, 0.0  ;;  %v557_v43 = vsel %vm539_vm10, %v1499_v42, 0.0  ;;  %v610_v44 = vsel %vm592_vm15, %v1501_v45, 0.0 }
  0x83   : > { %v786_v46 = vadd.f32 %v770_v28, %v733_v38  ;;  %v573_v47 = vadd.f32 %v557_v43, %v520_v41  ;;  %vm645_vm8 = vcmp.eq.s32.totalorder %v481_v33, %v1517_v55  ;;  %vm698_vm14 = vcmp.eq.s32.totalorder %v481_v33, %v1528_v63 }
  0x84   : > { %902 = vmatpush.msra.mxu0 %v893_v40  ;;  %v663_v50 = vsel %vm645_vm8, %v1510_v52, 0.0  ;;  %vm751_vm13 = vcmp.eq.s32.totalorder %v481_v33, %v1542_v11  ;;  %v716_v59 = vsel %vm698_vm14, %v1519_v57, 0.0  ;;  %vm804_vm3 = vcmp.eq.s32.totalorder %v481_v33, %v1544_v6 }
  0x85   : > { %v839_v56 = vadd.f32 %v823_v30, %v786_v46  ;;  %v626_v58 = vadd.f32 %v610_v44, %v573_v47  ;;  %vm857_vm0 = vcmp.eq.s32.totalorder %v481_v33, %v1554_v18  ;;  %vm501_vm1 = vcmp.eq.s32.totalorder %v1642_v35, %v1504_v48 }
  0x86   : > { %vm538_vm4 = vcmp.eq.s32.totalorder %v1642_v35, %v1506_v49  ;;  %vm591_vm5 = vcmp.eq.s32.totalorder %v1642_v35, %v1508_v51  ;;  %v769_v62 = vsel %vm751_vm13, %v1531_v3, 0.0  ;;  %v519_v0 = vsel %vm501_vm1, %v1495_v37, 0.0 }
  0x87   : > { %v892_v60 = vadd.f32 %v876_v31, %v839_v56  ;;  %v679_v61 = vadd.f32 %v663_v50, %v626_v58  ;;  %v556_v1 = vsel %vm538_vm4, %v1499_v42, 0.0  ;;  %v609_v2 = vsel %vm591_vm5, %v1501_v45, 0.0 }
  0x88   : > { %vm644_vm9 = vcmp.eq.s32.totalorder %v1642_v35, %v1517_v55  ;;  %vm697_vm11 = vcmp.eq.s32.totalorder %v1642_v35, %v1528_v63  ;;  %v822_v5 = vsel %vm804_vm3, %v1535_v8, 0.0  ;;  %v875_v7 = vsel %vm857_vm0, %v1546_v14, 0.0 }
  0x89   : > { %903 = vmatpush.msra.mxu0 %v892_v60  ;;  %v732_v4 = vadd.f32 %v716_v59, %v679_v61  ;;  %v572_v9 = vadd.f32 %v556_v1, %v519_v0  ;;  %v662_v10 = vsel %vm644_vm9, %v1510_v52, 0.0  ;;  %v715_v12 = vsel %vm697_vm11, %v1519_v57, 0.0 }
  0x8a   : > { %vm750_vm2 = vcmp.eq.s32.totalorder %v1642_v35, %v1542_v11  ;;  %vm500_vm12 = vcmp.eq.s32.totalorder %v1645_v36, %v1504_v48  ;;  %vm803_vm6 = vcmp.eq.s32.totalorder %v1642_v35, %v1544_v6  ;;  %vm856_vm7 = vcmp.eq.s32.totalorder %v1642_v35, %v1554_v18 }
  0x8b   : > { %v785_v13 = vadd.f32 %v769_v62, %v732_v4  ;;  %v625_v15 = vadd.f32 %v609_v2, %v572_v9  ;;  %v768_v16 = vsel %vm750_vm2, %v1531_v3, 0.0  ;;  %v518_v19 = vsel %vm500_vm12, %v1495_v37, 0.0 }
  0x8c   : > { %vm537_vm10 = vcmp.eq.s32.totalorder %v1645_v36, %v1506_v49  ;;  %vm590_vm15 = vcmp.eq.s32.totalorder %v1645_v36, %v1508_v51  ;;  %vm643_vm8 = vcmp.eq.s32.totalorder %v1645_v36, %v1517_v55  ;;  %vm696_vm14 = vcmp.eq.s32.totalorder %v1645_v36, %v1528_v63 }
  0x8d   : > { %v838_v20 = vadd.f32 %v822_v5, %v785_v13  ;;  %v678_v21 = vadd.f32 %v662_v10, %v625_v15  ;;  %v555_v22 = vsel %vm537_vm10, %v1499_v42, 0.0  ;;  %v608_v17 = vsel %vm590_vm15, %v1501_v45, 0.0 }
  0x8e   : > { %v571_v23 = vadd.f32 %v555_v22, %v518_v19  ;;  %vm749_vm13 = vcmp.eq.s32.totalorder %v1645_v36, %v1542_v11  ;;  %v821_v26 = vsel %vm803_vm6, %v1535_v8, 0.0  ;;  %v661_v27 = vsel %vm643_vm8, %v1510_v52, 0.0 }
  0x8f   : > { %v891_v24 = vadd.f32 %v875_v7, %v838_v20  ;;  %v731_v25 = vadd.f32 %v715_v12, %v678_v21  ;;  %v874_v28 = vsel %vm856_vm7, %v1546_v14, 0.0  ;;  %v714_v30 = vsel %vm696_vm14, %v1519_v57, 0.0 }
  0x90   : > { %v624_v29 = vadd.f32 %v608_v17, %v571_v23  ;;  %v767_v31 = vsel %vm749_vm13, %v1531_v3, 0.0  ;;  %vm802_vm3 = vcmp.eq.s32.totalorder %v1645_v36, %v1544_v6  ;;  %vm855_vm0 = vcmp.eq.s32.totalorder %v1645_v36, %v1554_v18 }
  0x91   : > { %904 = vmatpush.msra.mxu0 %v891_v24  ;;  %v784_v33 = vadd.f32 %v768_v16, %v731_v25  ;;  %vm499_vm1 = vcmp.eq.s32.totalorder %v1648_v32, %v1504_v48  ;;  %vm536_vm4 = vcmp.eq.s32.totalorder %v1648_v32, %v1506_v49  ;;  %vm589_vm5 = vcmp.eq.s32.totalorder %v1648_v32, %v1508_v51 }
  0x92   : > { %v677_v34 = vadd.f32 %v661_v27, %v624_v29  ;;  %v517_v35 = vsel %vm499_vm1, %v1495_v37, 0.0  ;;  %v554_v40 = vsel %vm536_vm4, %v1499_v42, 0.0  ;;  %v607_v41 = vsel %vm589_vm5, %v1501_v45, 0.0 }
  0x93   : > { %v837_v38 = vadd.f32 %v821_v26, %v784_v33  ;;  %vm642_vm9 = vcmp.eq.s32.totalorder %v1648_v32, %v1517_v55  ;;  %v820_v43 = vsel %vm802_vm3, %v1535_v8, 0.0  ;;  %v570_v44 = vadd.f32 %v554_v40, %v517_v35 }
  0x94   : > { %v730_v36 = vadd.f32 %v714_v30, %v677_v34  ;;  %vm695_vm11 = vcmp.eq.s32.totalorder %v1648_v32, %v1528_v63  ;;  %v873_v47 = vsel %vm855_vm0, %v1546_v14, 0.0  ;;  %v660_v50 = vsel %vm642_vm9, %v1510_v52, 0.0 }
  0x95   : > { %v890_v46 = vadd.f32 %v874_v28, %v837_v38  ;;  %vm748_vm2 = vcmp.eq.s32.totalorder %v1648_v32, %v1542_v11  ;;  %v623_v58 = vadd.f32 %v607_v41, %v570_v44  ;;  %v713_v59 = vsel %vm695_vm11, %v1519_v57, 0.0 }
  0x96   : > { %v783_v56 = vadd.f32 %v767_v31, %v730_v36  ;;  %vm801_vm12 = vcmp.eq.s32.totalorder %v1648_v32, %v1544_v6  ;;  %v766_v60 = vsel %vm748_vm2, %v1531_v3, 0.0  ;;  %vm498_vm6 = vcmp.eq.s32.totalorder %v1661_v53, %v1504_v48 }
  0x97   : > { %905 = vmatpush.msra.mxu0 %v890_v46  ;;  %vm535_vm7 = vcmp.eq.s32.totalorder %v1661_v53, %v1506_v49  ;;  %vm588_vm10 = vcmp.eq.s32.totalorder %v1661_v53, %v1508_v51  ;;  %v676_v62 = vadd.f32 %v660_v50, %v623_v58  ;;  %vm854_vm15 = vcmp.eq.s32.totalorder %v1648_v32, %v1554_v18 }
  0x98   : > { %v836_v61 = vadd.f32 %v820_v43, %v783_v56  ;;  %v516_v0 = vsel %vm498_vm6, %v1495_v37, 0.0  ;;  %v553_v1 = vsel %vm535_vm7, %v1499_v42, 0.0  ;;  %v606_v2 = vsel %vm588_vm10, %v1501_v45, 0.0 }
  0x99   : > { %vm641_vm8 = vcmp.eq.s32.totalorder %v1661_v53, %v1517_v55  ;;  %vm694_vm14 = vcmp.eq.s32.totalorder %v1661_v53, %v1528_v63  ;;  %v729_v5 = vadd.f32 %v713_v59, %v676_v62  ;;  %v819_v7 = vsel %vm801_vm12, %v1535_v8, 0.0 }
  0x9a   : > { %v889_v4 = vadd.f32 %v873_v47, %v836_v61  ;;  %v569_v9 = vadd.f32 %v553_v1, %v516_v0  ;;  %v872_v10 = vsel %vm854_vm15, %v1546_v14, 0.0  ;;  %v659_v12 = vsel %vm641_vm8, %v1510_v52, 0.0 }
  0x9b   : > { %v712_v13 = vsel %vm694_vm14, %v1519_v57, 0.0  ;;  %vm747_vm13 = vcmp.eq.s32.totalorder %v1661_v53, %v1542_v11  ;;  %v782_v15 = vadd.f32 %v766_v60, %v729_v5  ;;  %vm800_vm3 = vcmp.eq.s32.totalorder %v1661_v53, %v1544_v6 }
  0x9c   : > { %906 = vmatpush.msra.mxu0 %v889_v4  ;;  %v622_v16 = vadd.f32 %v606_v2, %v569_v9  ;;  %vm853_vm0 = vcmp.eq.s32.totalorder %v1661_v53, %v1554_v18  ;;  %v765_v32 = vsel %vm747_vm13, %v1531_v3, 0.0  ;;  %vm497_vm1 = vcmp.eq.s32.totalorder %v1664_v54, %v1504_v48 }
  0x9d   : > { %vm534_vm4 = vcmp.eq.s32.totalorder %v1664_v54, %v1506_v49  ;;  %vm587_vm5 = vcmp.eq.s32.totalorder %v1664_v54, %v1508_v51  ;;  %v835_v19 = vadd.f32 %v819_v7, %v782_v15  ;;  %v515_v21 = vsel %vm497_vm1, %v1495_v37, 0.0 }
  0x9e   : > { %v675_v20 = vadd.f32 %v659_v12, %v622_v16  ;;  %v552_v22 = vsel %vm534_vm4, %v1499_v42, 0.0  ;;  %v605_v23 = vsel %vm587_vm5, %v1501_v45, 0.0  ;;  %vm640_vm9 = vcmp.eq.s32.totalorder %v1664_v54, %v1517_v55 }
  0x9f   : > { %v568_v17 = vadd.f32 %v552_v22, %v515_v21  ;;  %vm693_vm11 = vcmp.eq.s32.totalorder %v1664_v54, %v1528_v63  ;;  %v888_v24 = vadd.f32 %v872_v10, %v835_v19  ;;  %v818_v26 = vsel %vm800_vm3, %v1535_v8, 0.0 }
  0xa0   : > { %v728_v25 = vadd.f32 %v712_v13, %v675_v20  ;;  %v658_v27 = vsel %vm640_vm9, %v1510_v52, 0.0  ;;  %vm746_vm2 = vcmp.eq.s32.totalorder %v1664_v54, %v1542_v11  ;;  %vm799_vm12 = vcmp.eq.s32.totalorder %v1664_v54, %v1544_v6 }
  0xa1   : > { %v621_v28 = vadd.f32 %v605_v23, %v568_v17  ;;  %vm852_vm6 = vcmp.eq.s32.totalorder %v1664_v54, %v1554_v18  ;;  %907 = vmatpush.msra.mxu0 %v888_v24  ;;  %v711_v30 = vsel %vm693_vm11, %v1519_v57, 0.0  ;;  %v871_v31 = vsel %vm853_vm0, %v1546_v14, 0.0 }
  0xa2   : > { %v781_v29 = vadd.f32 %v765_v32, %v728_v25  ;;  %v764_v34 = vsel %vm746_vm2, %v1531_v3, 0.0  ;;  %v475_v35 = vadd.s32 32, %v1497_v39  ;;  %v817_v40 = vsel %vm799_vm12, %v1535_v8, 0.0 }
  0xa3   : > { %v674_v33 = vadd.f32 %v658_v27, %v621_v28  ;;  %v870_v41 = vsel %vm852_vm6, %v1546_v14, 0.0  ;;  %v1809_v54 = vadd.s32 24, %v1497_v39  ;;  %v1822_v58 = vadd.s32 16, %v1497_v39 }
  0xa4   : > { %v834_v38 = vadd.f32 %v818_v26, %v781_v29  ;;  %vm496_vm7 = vcmp.eq.s32.totalorder %v475_v35, %v1504_v48  ;;  %vm533_vm10 = vcmp.eq.s32.totalorder %v475_v35, %v1506_v49  ;;  %vm586_vm15 = vcmp.eq.s32.totalorder %v475_v35, %v1508_v51 }
  0xa5   : > { %v727_v36 = vadd.f32 %v711_v30, %v674_v33  ;;  %v514_v43 = vsel %vm496_vm7, %v1495_v37, 0.0  ;;  %v551_v44 = vsel %vm533_vm10, %v1499_v42, 0.0  ;;  %v604_v46 = vsel %vm586_vm15, %v1501_v45, 0.0 }
  0xa6   : > { %v887_v53 = vadd.f32 %v871_v31, %v834_v38  ;;  %v567_v50 = vadd.f32 %v551_v44, %v514_v43  ;;  %vm639_vm8 = vcmp.eq.s32.totalorder %v475_v35, %v1517_v55  ;;  %vm692_vm14 = vcmp.eq.s32.totalorder %v475_v35, %v1528_v63 }
  0xa7   : > { %v780_v47 = vadd.f32 %v764_v34, %v727_v36  ;;  %v657_v56 = vsel %vm639_vm8, %v1510_v52, 0.0  ;;  %vm745_vm13 = vcmp.eq.s32.totalorder %v475_v35, %v1542_v11  ;;  %v1825_v59 = vadd.s32 8, %v1497_v39 }
  0xa8   : > { %908 = vmatpush.msra.mxu0 %v887_v53  ;;  %v620_v61 = vadd.f32 %v604_v46, %v567_v50  ;;  %v710_v62 = vsel %vm692_vm14, %v1519_v57, 0.0  ;;  %vm798_vm3 = vcmp.eq.s32.totalorder %v475_v35, %v1544_v6  ;;  %vm851_vm0 = vcmp.eq.s32.totalorder %v475_v35, %v1554_v18 }
  0xa9   : > { %v833_v60 = vadd.f32 %v817_v40, %v780_v47  ;;  %vm495_vm1 = vcmp.eq.s32.totalorder %v1809_v54, %v1504_v48  ;;  %vm532_vm4 = vcmp.eq.s32.totalorder %v1809_v54, %v1506_v49  ;;  %vm585_vm5 = vcmp.eq.s32.totalorder %v1809_v54, %v1508_v51 }
  0xaa   : > { %v673_v1 = vadd.f32 %v657_v56, %v620_v61  ;;  %v763_v2 = vsel %vm745_vm13, %v1531_v3, 0.0  ;;  %v513_v4 = vsel %vm495_vm1, %v1495_v37, 0.0  ;;  %v550_v5 = vsel %vm532_vm4, %v1499_v42, 0.0 }
  0xab   : > { %v886_v0 = vadd.f32 %v870_v41, %v833_v60  ;;  %v603_v7 = vsel %vm585_vm5, %v1501_v45, 0.0  ;;  %vm638_vm9 = vcmp.eq.s32.totalorder %v1809_v54, %v1517_v55  ;;  %vm691_vm11 = vcmp.eq.s32.totalorder %v1809_v54, %v1528_v63 }
  0xac   : > { %v726_v9 = vadd.f32 %v710_v62, %v673_v1  ;;  %v816_v10 = vsel %vm798_vm3, %v1535_v8, 0.0  ;;  %v869_v12 = vsel %vm851_vm0, %v1546_v14, 0.0  ;;  %v566_v13 = vadd.f32 %v550_v5, %v513_v4 }
  0xad   : > { %909 = vmatpush.msra.mxu0 %v886_v0  ;;  %v656_v15 = vsel %vm638_vm9, %v1510_v52, 0.0  ;;  %v709_v16 = vsel %vm691_vm11, %v1519_v57, 0.0  ;;  %vm744_vm2 = vcmp.eq.s32.totalorder %v1809_v54, %v1542_v11  ;;  %vm494_vm12 = vcmp.eq.s32.totalorder %v1822_v58, %v1504_v48 }
  0xae   : > { %v779_v32 = vadd.f32 %v763_v2, %v726_v9  ;;  %v619_v19 = vadd.f32 %v603_v7, %v566_v13  ;;  %vm797_vm6 = vcmp.eq.s32.totalorder %v1809_v54, %v1544_v6  ;;  %vm850_vm7 = vcmp.eq.s32.totalorder %v1809_v54, %v1554_v18 }
  0xaf   : > { %v762_v20 = vsel %vm744_vm2, %v1531_v3, 0.0  ;;  %v512_v21 = vsel %vm494_vm12, %v1495_v37, 0.0  ;;  %vm531_vm10 = vcmp.eq.s32.totalorder %v1822_v58, %v1506_v49  ;;  %vm584_vm15 = vcmp.eq.s32.totalorder %v1822_v58, %v1508_v51 }
  0xb0   : > { %vm492_vm8 = vcmp.eq.s32.totalorder %v1497_v39, %v1504_v48  ;;  %vm529_vm14 = vcmp.eq.s32.totalorder %v1497_v39, %v1506_v49  ;;  %v832_v22 = vadd.f32 %v816_v10, %v779_v32  ;;  %v672_v17 = vadd.f32 %v656_v15, %v619_v19 }
  0xb1   : > { %v549_v23 = vsel %vm531_vm10, %v1499_v42, 0.0  ;;  %v602_v24 = vsel %vm584_vm15, %v1501_v45, 0.0  ;;  %vm637_vm13 = vcmp.eq.s32.totalorder %v1822_v58, %v1517_v55  ;;  %vm690_vm3 = vcmp.eq.s32.totalorder %v1822_v58, %v1528_v63 }
  0xb2   : > { %v565_v25 = vadd.f32 %v549_v23, %v512_v21  ;;  %vm743_vm0 = vcmp.eq.s32.totalorder %v1822_v58, %v1542_v11  ;;  %v885_v26 = vadd.f32 %v869_v12, %v832_v22  ;;  %v725_v27 = vadd.f32 %v709_v16, %v672_v17  ;;  %v898_v16 = vld [vmem:[%s1346_s1] sm:$0x7] }
  0xb3   : > { %v815_v28 = vsel %vm797_vm6, %v1535_v8, 0.0  ;;  %v655_v29 = vsel %vm637_vm13, %v1510_v52, 0.0  ;;  %v868_v30 = vsel %vm850_vm7, %v1546_v14, 0.0  ;;  %v708_v33 = vsel %vm690_vm3, %v1519_v57, 0.0 }
  0xb4   : > { %v618_v31 = vadd.f32 %v602_v24, %v565_v25  ;;  %v761_v34 = vsel %vm743_vm0, %v1531_v3, 0.0  ;;  %910 = vmatpush.msra.mxu0 %v885_v26  ;;  %v778_v35 = vadd.f32 %v762_v20, %v725_v27  ;;  %vm796_vm1 = vcmp.eq.s32.totalorder %v1822_v58, %v1544_v6 }
  0xb5   : > { %vm849_vm4 = vcmp.eq.s32.totalorder %v1822_v58, %v1554_v18  ;;  %vm493_vm5 = vcmp.eq.s32.totalorder %v1825_v59, %v1504_v48  ;;  %vm530_vm9 = vcmp.eq.s32.totalorder %v1825_v59, %v1506_v49  ;;  %vm583_vm11 = vcmp.eq.s32.totalorder %v1825_v59, %v1508_v51 }
  0xb6   : > { %v671_v38 = vadd.f32 %v655_v29, %v618_v31  ;;  %v511_v40 = vsel %vm493_vm5, %v1495_v37, 0.0  ;;  %v831_v41 = vadd.f32 %v815_v28, %v778_v35  ;;  %v548_v54 = vsel %vm530_vm9, %v1499_v42, 0.0 }
  0xb7   : > { %v601_v36 = vsel %vm583_vm11, %v1501_v45, 0.0  ;;  %vm636_vm2 = vcmp.eq.s32.totalorder %v1825_v59, %v1517_v55  ;;  %v814_v43 = vsel %vm796_vm1, %v1535_v8, 0.0  ;;  %v564_v44 = vadd.f32 %v548_v54, %v511_v40 }
  0xb8   : > { %v724_v53 = vadd.f32 %v708_v33, %v671_v38  ;;  %vm689_vm12 = vcmp.eq.s32.totalorder %v1825_v59, %v1528_v63  ;;  %v884_v46 = vadd.f32 %v868_v30, %v831_v41  ;;  %v867_v47 = vsel %vm849_vm4, %v1546_v14, 0.0 }
  0xb9   : > { %v654_v50 = vsel %vm636_vm2, %v1510_v52, 0.0  ;;  %vm742_vm6 = vcmp.eq.s32.totalorder %v1825_v59, %v1542_v11  ;;  %v617_v58 = vadd.f32 %v601_v36, %v564_v44  ;;  %v707_v60 = vsel %vm689_vm12, %v1519_v57, 0.0 }
  0xba   : > { %v777_v56 = vadd.f32 %v761_v34, %v724_v53  ;;  %vm795_vm7 = vcmp.eq.s32.totalorder %v1825_v59, %v1544_v6  ;;  %911 = vmatpush.msra.mxu0 %v884_v46  ;;  %v760_v61 = vsel %vm742_vm6, %v1531_v3, 0.0  ;;  %v510_v62 = vsel %vm492_vm8, %v1495_v37, 0.0 }
  0xbb   : > { %v547_v0 = vsel %vm529_vm14, %v1499_v42, 0.0  ;;  %vm582_vm10 = vcmp.eq.s32.totalorder %v1497_v39, %v1508_v51  ;;  %v670_v2 = vadd.f32 %v654_v50, %v617_v58  ;;  %vm848_vm15 = vcmp.eq.s32.totalorder %v1825_v59, %v1554_v18  ;;  %v897_v59 = vld [vmem:[#allocation2] sm:$0x7] }
  0xbc   : > { %v830_v1 = vadd.f32 %v814_v43, %v777_v56  ;;  %v563_v4 = vadd.f32 %v547_v0, %v510_v62  ;;  %v600_v5 = vsel %vm582_vm10, %v1501_v45, 0.0  ;;  %vm635_vm13 = vcmp.eq.s32.totalorder %v1497_v39, %v1517_v55 }
  0xbd   : > { %vm688_vm8 = vcmp.eq.s32.totalorder %v1497_v39, %v1528_v63  ;;  %vm741_vm14 = vcmp.eq.s32.totalorder %v1497_v39, %v1542_v11  ;;  %v723_v42 = vadd.f32 %v707_v60, %v670_v2  ;;  %v653_v49 = vsel %vm635_vm13, %v1510_v52, 0.0 }
  0xbe   : > { %v883_v37 = vadd.f32 %v867_v47, %v830_v1  ;;  %v616_v48 = vadd.f32 %v600_v5, %v563_v4  ;;  %v813_v51 = vsel %vm795_vm7, %v1535_v8, 0.0  ;;  %v706_v45 = vsel %vm688_vm8, %v1519_v57, 0.0 }
  0xbf   : > { %v776_v55 = vadd.f32 %v760_v61, %v723_v42  ;;  %vm794_vm3 = vcmp.eq.s32.totalorder %v1497_v39, %v1544_v6  ;;  %v866_v63 = vsel %vm848_vm15, %v1546_v14, 0.0  ;;  %v759_v52 = vsel %vm741_vm14, %v1531_v3, 0.0 }
  0xc0   : > { %912 = vmatpush.msra.mxu0 %v883_v37  ;;  %v669_v7 = vadd.f32 %v653_v49, %v616_v48  ;;  %vm847_vm0 = vcmp.eq.s32.totalorder %v1497_v39, %v1554_v18  ;;  %v812_v57 = vsel %vm794_vm3, %v1535_v8, 0.0 }
  0xc1   : > { %v829_v11 = vadd.f32 %v813_v51, %v776_v55  ;;  %v865_v13 = vsel %vm847_vm0, %v1546_v14, 0.0 }
  0xc2   : > { %v722_v9 = vadd.f32 %v706_v45, %v669_v7 }
  0xc3   : > { %v882_v10 = vadd.f32 %v866_v63, %v829_v11 }
  0xc4   : > { %v775_v12 = vadd.f32 %v759_v52, %v722_v9 }
  0xc5   : > { %913 = vmatpush.msra.mxu0 %v882_v10 }
  0xc6   : > { %v828_v6 = vadd.f32 %v812_v57, %v775_v12 }
  0xc8   : > { %v881_v15 = vadd.f32 %v865_v13, %v828_v6 }
  0xca   : > { %914 = vmatpush.msra.mxu0 %v881_v15 }
  0xcb   : > { %915 = vmatmul.f32.vlgmr.msra.gmra.mxu0 %v898_v16 }
 0x148   : > { %v916_v32 = vpop.f32.mrf.mxu0 }
 0x149   : > { %v919_v3 = vadd.f32 %v916_v32, %v897_v59 }
 0x14b   : > { %920 = vst [vmem:[#allocation2] sm:$0x7] %v919_v3 }
 0x14c PF: > { %p1067_p13 = scmp.ne.s32.totalorder %s1209_s0, 7 }
 0x14e   : > { %924 = sbr.rel (%p1067_p13) target bundleno = 341 (0x155), region = 44 }
 0x153   : > { %v925_v39 = vld [vmem:[#allocation2] sm:$0x7] }
 0x154   : > { %926 = vst [vmem:[%s1340_s8] sm:$0x7] %v925_v39 }
 0x155 PF: > { %s34_s13 = sadd.s32 1, %s1233_s13   ;;  %s2000_s0 = smov %s1221_s10 }
 0x156   : > { %p31_p0 = scmp.ge.s32.totalorder %s34_s13, 130   ;;  %s2001_s9 = smov %s1225_s11 }
 0x157   : > { %s2002_s1 = smov %s1229_s12  ;;  %s2003_s10 = smov %s2007_s2 }
 0x158   : > { %s2004_s11 = smov %s2011_s14  ;;  %s2005_s12 = smov %s2015_s15 }
 0x159   :  { %33 = sbr.rel (!%p31_p0) target bundleno = 13 (0xd), region = 80 }

</bundles_post_ra>
